<compile_context>
chip_gen: v7x
topology: tpu7x:2x2x1
jax: 0.10.0
libtpu: 0.0.40
codegen_flags: <defaults>
</compile_context>

<pallas_src>
import functools
import math

import jax
import jax.numpy as jnp
from jax.experimental import pallas as pl
from jax.experimental.pallas import tpu as pltpu


def _layernorm(x, g, b, eps=1e-5):
    # One-pass LN: mean and mean-of-squares together (var = E[x^2] - mean^2).
    mu = jnp.mean(x, axis=-1, keepdims=True)
    ms = jnp.mean(x * x, axis=-1, keepdims=True)
    var = ms - mu * mu
    return (x - mu) * jax.lax.rsqrt(var + eps) * g + b


def block_kernel(x_ref, mask_ref,
                 wqkv_ref, wp_ref, bp_ref,
                 g1_ref, b1_ref, g2_ref, b2_ref,
                 w1_ref, bb1_ref, w2_ref, bb2_ref,
                 o_ref, *, n_head, head_size):
    bt, T, E = x_ref.shape
    H, hs = n_head, head_size
    # Flatten batch*seq rows: all dense projections become plain 2-D matmuls.
    x = x_ref[...].astype(jnp.float32).reshape(bt * T, E)

    # ---------------- self-attention branch ----------------
    xl = _layernorm(x, g1_ref[...], b1_ref[...])
    # Fused QKV projection (attention scale already folded into Q columns).
    qkv = jnp.dot(xl.astype(jnp.bfloat16), wqkv_ref[...],
                  preferred_element_type=jnp.float32)          # (bt*T, 3E)

    # Single head-major relayout of the fused qkv, then split q/k/v on a
    # MAJOR axis (no lane-offset slicing) and fold (batch, head) into one
    # leading batch dim for the attention einsums.
    qkvh = jnp.swapaxes(qkv.reshape(bt, T, 3 * H, hs), 1, 2)   # (bt, 3H, T, hs)
    qh = qkvh[:, :H].reshape(bt * H, T, hs).astype(jnp.bfloat16)
    kh = qkvh[:, H:2 * H].reshape(bt * H, T, hs).astype(jnp.bfloat16)
    vh = qkvh[:, 2 * H:].reshape(bt * H, T, hs).astype(jnp.bfloat16)

    s = jnp.einsum('gtd,gsd->gts', qh, kh,
                   preferred_element_type=jnp.float32)         # (bt*H, T, T)
    s = s + mask_ref[...]                                      # additive causal bias
    s = s - jnp.max(s, axis=-1, keepdims=True)
    p = jnp.exp(s)
    inv_den = pl.reciprocal(jnp.sum(p, axis=-1, keepdims=True), approx=True)
    wei = (p * inv_den).astype(jnp.bfloat16)                   # softmax (dropout == identity)

    out_h = jnp.einsum('gts,gsd->gtd', wei, vh,
                       preferred_element_type=jnp.float32)     # (bt*H, T, hs)
    att = jnp.swapaxes(out_h.reshape(bt, H, T, hs), 1, 2).reshape(bt * T, E)

    sa = jnp.dot(att.astype(jnp.bfloat16), wp_ref[...],
                 preferred_element_type=jnp.float32) + bp_ref[...]
    x = x + sa

    # ---------------- feed-forward branch ----------------
    xl2 = _layernorm(x, g2_ref[...], b2_ref[...])
    h1 = jnp.dot(xl2.astype(jnp.bfloat16), w1_ref[...],
                 preferred_element_type=jnp.float32) + bb1_ref[...]
    # tanh-approx GELU: tanh runs on the EUP slot instead of a long erf
    # polynomial on the VALU; error well inside tolerance.
    c0 = jnp.float32(0.7978845608028654)   # sqrt(2/pi)
    c1 = jnp.float32(0.044715)
    h1 = 0.5 * h1 * (1.0 + jnp.tanh(c0 * (h1 + c1 * h1 * h1 * h1)))
    h2 = jnp.dot(h1.astype(jnp.bfloat16), w2_ref[...],
                 preferred_element_type=jnp.float32) + bb2_ref[...]

    # NOTE: at real sizes keep E a multiple of 128 so this store is an
    # unmasked lane-dense vst; the toy E=32 store is necessarily masked.
    o_ref[...] = (x + h2).reshape(bt, T, E).astype(o_ref.dtype)


def prepare_block_params(params, *, seq_len):
    """One-time parameter prep (hoisted out of the per-call path):
    QKV fusion + scale folding + bf16 casts + additive causal-mask build."""
    scale = jnp.float32(64.0 ** (-0.5))    # NOTE: reference Head hardcodes E2=64
    wqkv = jnp.concatenate(
        [params["wq"] * scale, params["wk"], params["wv"]], axis=1
    ).astype(jnp.bfloat16)                 # columns stay per-head contiguous
    row = jnp.arange(seq_len)[:, None]
    col = jnp.arange(seq_len)[None, :]
    mask = jnp.where(row >= col, 0.0, -1e30).astype(jnp.float32)
    return (
        mask,
        wqkv,
        params["wp"].astype(jnp.bfloat16),
        params["bp"].astype(jnp.float32),
        params["g1"], params["b1"], params["g2"], params["b2"],
        params["w1"].astype(jnp.bfloat16),
        params["bb1"],
        params["w2"].astype(jnp.bfloat16),
        params["bb2"],
    )


def _vmem_limit_bytes(bt, t, e, h):
    """Derive the VMEM budget from actual buffer sizes (cap for v7x 64 MiB)."""
    f = 4 * e
    bf16, f32 = 2, 4
    weights = bf16 * (3 * e * e + e * e + e * f + f * e)      # wqkv, wp, w1, w2
    small = f32 * (t * t + 8 * e + 2 * f)                     # mask + LN/bias rows
    io = 2 * 2 * bt * t * e * f32                             # x/out double-buffered
    acts = f32 * (bt * t * (3 * e + 2 * e + f + 2 * e) + 3 * bt * h * t * t)
    est = weights + small + io + 4 * acts                     # headroom for temporaries
    return int(min(max(est, 16 * 1024 * 1024), 40 * 1024 * 1024))


def transformer_block(x, prepared, *, n_head, batch_tile=None):
    B, T, E = x.shape
    head_size = E // n_head
    mask = prepared[0]
    assert mask.shape == (T, T), "prepared mask was built for a different seq_len"

    # At toy sizes the whole batch fits one block (grid=(1,)) so per-step
    # overhead (~0.35 us) is paid once; set batch_tile=1 for large batches to
    # feed both v7x TensorCores via the parallel grid axis.
    bt = batch_tile or B
    assert B % bt == 0

    def const_spec(a):
        # Constant index_map across the grid -> single buffer is enough.
        return pl.BlockSpec(a.shape, lambda b: (0, 0),
                            pipeline_mode=pl.Buffered(buffer_count=1))

    grid_spec = pltpu.PrefetchScalarGridSpec(
        num_scalar_prefetch=0,
        grid=(B // bt,),
        in_specs=[pl.BlockSpec((bt, T, E), lambda b: (b, 0, 0))]
                 + [const_spec(a) for a in prepared],
        out_specs=pl.BlockSpec((bt, T, E), lambda b: (b, 0, 0)),
    )

    kernel = functools.partial(block_kernel, n_head=n_head, head_size=head_size)
    return pl.pallas_call(
        kernel,
        out_shape=jax.ShapeDtypeStruct((B, T, E), x.dtype),
        grid_spec=grid_spec,
        compiler_params=pltpu.CompilerParams(
            dimension_semantics=("parallel",),
            vmem_limit_bytes=_vmem_limit_bytes(bt, T, E, n_head),
        ),
    )(x, *prepared)


def reference_block(x, params, *, n_head):
    """Pure-JAX (f32) reference mirroring the PyTorch Block (eval mode)."""
    B, T, E = x.shape
    hs = E // n_head
    p = params

    def ln(y, g, b):
        mu = y.mean(-1, keepdims=True)
        var = ((y - mu) ** 2).mean(-1, keepdims=True)
        return (y - mu) / jnp.sqrt(var + 1e-5) * g + b

    xl = ln(x, p["g1"], p["b1"])
    q, k, v = xl @ p["wq"], xl @ p["wk"], xl @ p["wv"]
    row = jnp.arange(T)[:, None]
    col = jnp.arange(T)[None, :]
    causal = row >= col
    scale = 64.0 ** (-0.5)
    outs = []
    for h in range(n_head):
        sl = slice(h * hs, (h + 1) * hs)
        wei = jnp.einsum("btd,bsd->bts", q[..., sl], k[..., sl]) * scale
        wei = jnp.where(causal, wei, -jnp.inf)
        wei = jax.nn.softmax(wei, axis=-1)
        outs.append(jnp.einsum("bts,bsd->btd", wei, v[..., sl]))
    sa = jnp.concatenate(outs, -1) @ p["wp"] + p["bp"][0]
    x = x + sa
    xl2 = ln(x, p["g2"], p["b2"])
    h1 = xl2 @ p["w1"] + p["bb1"][0]
    h1 = 0.5 * h1 * (1.0 + jax.lax.erf(h1 / math.sqrt(2.0)))
    return x + h1 @ p["w2"] + p["bb2"][0]


def init_params(key, n_embd):
    E, F = n_embd, 4 * n_embd
    ks = jax.random.split(key, 12)
    s = 0.05
    return {
        "wq": jax.random.normal(ks[0], (E, E), jnp.float32) * s,
        "wk": jax.random.normal(ks[1], (E, E), jnp.float32) * s,
        "wv": jax.random.normal(ks[2], (E, E), jnp.float32) * s,
        "wp": jax.random.normal(ks[3], (E, E), jnp.float32) * s,
        "bp": jax.random.normal(ks[4], (1, E), jnp.float32) * s,
        "g1": 1.0 + jax.random.normal(ks[5], (1, E), jnp.float32) * 0.01,
        "b1": jax.random.normal(ks[6], (1, E), jnp.float32) * 0.01,
        "g2": 1.0 + jax.random.normal(ks[7], (1, E), jnp.float32) * 0.01,
        "b2": jax.random.normal(ks[8], (1, E), jnp.float32) * 0.01,
        "w1": jax.random.normal(ks[9], (E, F), jnp.float32) * s,
        "bb1": jax.random.normal(ks[10], (1, F), jnp.float32) * s,
        "w2": jax.random.normal(ks[11], (F, E), jnp.float32) * s,
        "bb2": jnp.zeros((1, E), jnp.float32),
    }


if __name__ == "__main__":
    # Small shapes consistent with the module: n_embd=32, n_head=4, T=8 (<= block_size)
    B, T, E, n_head = 2, 8, 32, 4

    key = jax.random.PRNGKey(0)
    kx, kp = jax.random.split(key)
    x = jax.random.normal(kx, (B, T, E), jnp.float32)
    params = init_params(kp, E)

    # One-time parameter prep (reused across every forward call).
    prepared = prepare_block_params(params, seq_len=T)
    prepared = jax.block_until_ready(prepared)

    out = transformer_block(x, prepared, n_head=n_head)
    out = jax.block_until_ready(out)

    ref = reference_block(x, params, n_head=n_head)
    assert out.shape == (B, T, E)
    # bf16 MXU operands (f32 accumulation) + tanh-GELU -> looser tolerance than pure f32.
    assert jnp.max(jnp.abs(out - ref)) < 2e-2, "Pallas kernel mismatch vs JAX reference"

    print("KERNEL_OK")
</pallas_src>

<mosaic_0001>
module attributes {stable_mosaic.version = 11 : i64} {
  func.func @block_kernel(%arg0: i32, %arg1: memref<2x8x32xf32, #tpu.memory_space<vmem>>, %arg2: memref<8x8xf32, #tpu.memory_space<vmem>>, %arg3: memref<32x96xbf16, #tpu.memory_space<vmem>>, %arg4: memref<32x32xbf16, #tpu.memory_space<vmem>>, %arg5: memref<1x32xf32, #tpu.memory_space<vmem>>, %arg6: memref<1x32xf32, #tpu.memory_space<vmem>>, %arg7: memref<1x32xf32, #tpu.memory_space<vmem>>, %arg8: memref<1x32xf32, #tpu.memory_space<vmem>>, %arg9: memref<1x32xf32, #tpu.memory_space<vmem>>, %arg10: memref<32x128xbf16, #tpu.memory_space<vmem>>, %arg11: memref<1x128xf32, #tpu.memory_space<vmem>>, %arg12: memref<128x32xbf16, #tpu.memory_space<vmem>>, %arg13: memref<1x32xf32, #tpu.memory_space<vmem>>, %arg14: memref<2x8x32xf32, #tpu.memory_space<vmem>>) attributes {dimension_semantics = [#tpu.dimension_semantics<parallel>], iteration_bounds = array<i64: 1>, scalar_prefetch = 0 : i64, scratch_operands = 0 : i64, tpu.core_type = #tpu.core_type<tc>, window_params = [{transform_indices = @transform_0, window_bounds = array<i64: 2, 8, 32>}, {pipeline_mode = #tpu.pipeline_mode<synchronous>, transform_indices = @transform_1, window_bounds = array<i64: 8, 8>}, {pipeline_mode = #tpu.pipeline_mode<synchronous>, transform_indices = @transform_2, window_bounds = array<i64: 32, 96>}, {pipeline_mode = #tpu.pipeline_mode<synchronous>, transform_indices = @transform_3, window_bounds = array<i64: 32, 32>}, {pipeline_mode = #tpu.pipeline_mode<synchronous>, transform_indices = @transform_4, window_bounds = array<i64: 1, 32>}, {pipeline_mode = #tpu.pipeline_mode<synchronous>, transform_indices = @transform_5, window_bounds = array<i64: 1, 32>}, {pipeline_mode = #tpu.pipeline_mode<synchronous>, transform_indices = @transform_6, window_bounds = array<i64: 1, 32>}, {pipeline_mode = #tpu.pipeline_mode<synchronous>, transform_indices = @transform_7, window_bounds = array<i64: 1, 32>}, {pipeline_mode = #tpu.pipeline_mode<synchronous>, transform_indices = @transform_8, window_bounds = array<i64: 1, 32>}, {pipeline_mode = #tpu.pipeline_mode<synchronous>, transform_indices = @transform_9, window_bounds = array<i64: 32, 128>}, {pipeline_mode = #tpu.pipeline_mode<synchronous>, transform_indices = @transform_10, window_bounds = array<i64: 1, 128>}, {pipeline_mode = #tpu.pipeline_mode<synchronous>, transform_indices = @transform_11, window_bounds = array<i64: 128, 32>}, {pipeline_mode = #tpu.pipeline_mode<synchronous>, transform_indices = @transform_12, window_bounds = array<i64: 1, 32>}, {transform_indices = @transform_13, window_bounds = array<i64: 2, 8, 32>}]} {
    %c0 = arith.constant 0 : index
    %c0_0 = arith.constant 0 : index
    %c0_1 = arith.constant 0 : index
    %0 = vector.load %arg1[%c0, %c0_0, %c0_1] : memref<2x8x32xf32, #tpu.memory_space<vmem>>, vector<2x8x32xf32>
    %1 = vector.shape_cast %0 : vector<2x8x32xf32> to vector<16x32xf32>
    %c0_2 = arith.constant 0 : index
    %c0_3 = arith.constant 0 : index
    %2 = vector.load %arg6[%c0_2, %c0_3] : memref<1x32xf32, #tpu.memory_space<vmem>>, vector<1x32xf32>
    %c0_4 = arith.constant 0 : index
    %c0_5 = arith.constant 0 : index
    %3 = vector.load %arg7[%c0_4, %c0_5] : memref<1x32xf32, #tpu.memory_space<vmem>>, vector<1x32xf32>
    %cst = arith.constant dense<0.000000e+00> : vector<16xf32>
    %4 = vector.multi_reduction <add>, %1, %cst [1] : vector<16x32xf32> to vector<16xf32>
    %5 = vector.shape_cast %4 : vector<16xf32> to vector<16x1xf32>
    %cst_6 = arith.constant 3.200000e+01 : f32
    %6 = vector.broadcast %cst_6 : f32 to vector<16x1xf32>
    %7 = arith.divf %5, %6 : vector<16x1xf32>
    %8 = arith.mulf %1, %1 : vector<16x32xf32>
    %cst_7 = arith.constant dense<0.000000e+00> : vector<16xf32>
    %9 = vector.multi_reduction <add>, %8, %cst_7 [1] : vector<16x32xf32> to vector<16xf32>
    %10 = vector.shape_cast %9 : vector<16xf32> to vector<16x1xf32>
    %cst_8 = arith.constant 3.200000e+01 : f32
    %11 = vector.broadcast %cst_8 : f32 to vector<16x1xf32>
    %12 = arith.divf %10, %11 : vector<16x1xf32>
    %13 = arith.mulf %7, %7 : vector<16x1xf32>
    %14 = arith.subf %12, %13 : vector<16x1xf32>
    %15 = vector.broadcast %7 : vector<16x1xf32> to vector<16x32xf32>
    %16 = arith.subf %1, %15 : vector<16x32xf32>
    %cst_9 = arith.constant 9.99999974E-6 : f32
    %17 = vector.broadcast %cst_9 : f32 to vector<16x1xf32>
    %18 = arith.addf %14, %17 : vector<16x1xf32>
    %19 = math.rsqrt %18 : vector<16x1xf32>
    %20 = vector.broadcast %19 : vector<16x1xf32> to vector<16x32xf32>
    %21 = arith.mulf %16, %20 : vector<16x32xf32>
    %22 = vector.broadcast %2 : vector<1x32xf32> to vector<16x32xf32>
    %23 = arith.mulf %21, %22 : vector<16x32xf32>
    %24 = vector.broadcast %3 : vector<1x32xf32> to vector<16x32xf32>
    %25 = arith.addf %23, %24 : vector<16x32xf32>
    %26 = arith.truncf %25 : vector<16x32xf32> to vector<16x32xbf16>
    %c0_10 = arith.constant 0 : index
    %c0_11 = arith.constant 0 : index
    %27 = vector.load %arg3[%c0_10, %c0_11] : memref<32x96xbf16, #tpu.memory_space<vmem>>, vector<32x96xbf16>
    %cst_12 = arith.constant dense<0.000000e+00> : vector<16x96xf32>
    %28 = tpu.matmul %26, %27, %cst_12 {dimension_numbers = #tpu.dot_dimension_numbers<[1], [0], [0], [1], [0, 0, 1, 1], [], []>} : vector<16x32xbf16>, vector<32x96xbf16>, vector<16x96xf32> -> vector<16x96xf32>
    %29 = vector.shape_cast %28 : vector<16x96xf32> to vector<2x8x12x8xf32>
    %30 = tpu.transpose %29, [0, 2, 1, 3] : vector<2x8x12x8xf32> -> vector<2x12x8x8xf32>
    %31 = vector.extract_strided_slice %30 {offsets = [0, 0, 0, 0], sizes = [2, 4, 8, 8], strides = [1, 1, 1, 1]} : vector<2x12x8x8xf32> to vector<2x4x8x8xf32>
    %32 = vector.shape_cast %31 : vector<2x4x8x8xf32> to vector<8x8x8xf32>
    %33 = arith.truncf %32 : vector<8x8x8xf32> to vector<8x8x8xbf16>
    %34 = vector.extract_strided_slice %30 {offsets = [0, 4, 0, 0], sizes = [2, 4, 8, 8], strides = [1, 1, 1, 1]} : vector<2x12x8x8xf32> to vector<2x4x8x8xf32>
    %35 = vector.shape_cast %34 : vector<2x4x8x8xf32> to vector<8x8x8xf32>
    %36 = arith.truncf %35 : vector<8x8x8xf32> to vector<8x8x8xbf16>
    %37 = vector.extract_strided_slice %30 {offsets = [0, 8, 0, 0], sizes = [2, 4, 8, 8], strides = [1, 1, 1, 1]} : vector<2x12x8x8xf32> to vector<2x4x8x8xf32>
    %38 = vector.shape_cast %37 : vector<2x4x8x8xf32> to vector<8x8x8xf32>
    %39 = arith.truncf %38 : vector<8x8x8xf32> to vector<8x8x8xbf16>
    "tpu.trace_start"() <{level = 10 : i32, message = "gtd,gsd->gts"}> : () -> ()
    %cst_13 = arith.constant dense<0.000000e+00> : vector<8x8x8xf32>
    %40 = tpu.matmul %33, %36, %cst_13 {dimension_numbers = #tpu.dot_dimension_numbers<[2], [2], [1], [1], [0, 0, 0, 1, 1, 1], [0], [0]>} : vector<8x8x8xbf16>, vector<8x8x8xbf16>, vector<8x8x8xf32> -> vector<8x8x8xf32>
    "tpu.trace_stop"() : () -> ()
    %c0_14 = arith.constant 0 : index
    %c0_15 = arith.constant 0 : index
    %41 = vector.load %arg2[%c0_14, %c0_15] : memref<8x8xf32, #tpu.memory_space<vmem>>, vector<8x8xf32>
    %42 = vector.shape_cast %41 : vector<8x8xf32> to vector<1x8x8xf32>
    %43 = vector.broadcast %42 : vector<1x8x8xf32> to vector<8x8x8xf32>
    %44 = arith.addf %40, %43 : vector<8x8x8xf32>
    %cst_16 = arith.constant dense<0xFF800000> : vector<8x8xf32>
    %45 = vector.multi_reduction <maximumf>, %44, %cst_16 [2] : vector<8x8x8xf32> to vector<8x8xf32>
    %46 = vector.shape_cast %45 : vector<8x8xf32> to vector<8x8x1xf32>
    %47 = vector.broadcast %46 : vector<8x8x1xf32> to vector<8x8x8xf32>
    %48 = arith.subf %44, %47 : vector<8x8x8xf32>
    %49 = math.exp %48 : vector<8x8x8xf32>
    %cst_17 = arith.constant dense<0.000000e+00> : vector<8x8xf32>
    %50 = vector.multi_reduction <add>, %49, %cst_17 [2] : vector<8x8x8xf32> to vector<8x8xf32>
    %51 = vector.shape_cast %50 : vector<8x8xf32> to vector<8x8x1xf32>
    %52 = tpu.reciprocal %51 {approx = true} : vector<8x8x1xf32> -> vector<8x8x1xf32>
    %53 = vector.broadcast %52 : vector<8x8x1xf32> to vector<8x8x8xf32>
    %54 = arith.mulf %49, %53 : vector<8x8x8xf32>
    %55 = arith.truncf %54 : vector<8x8x8xf32> to vector<8x8x8xbf16>
    "tpu.trace_start"() <{level = 10 : i32, message = "gts,gsd->gtd"}> : () -> ()
    %cst_18 = arith.constant dense<0.000000e+00> : vector<8x8x8xf32>
    %56 = tpu.matmul %55, %39, %cst_18 {dimension_numbers = #tpu.dot_dimension_numbers<[2], [1], [1], [2], [0, 0, 0, 1, 1, 2], [0], [0]>} : vector<8x8x8xbf16>, vector<8x8x8xbf16>, vector<8x8x8xf32> -> vector<8x8x8xf32>
    "tpu.trace_stop"() : () -> ()
    %57 = vector.shape_cast %56 : vector<8x8x8xf32> to vector<2x4x8x8xf32>
    %58 = tpu.transpose %57, [0, 2, 1, 3] : vector<2x4x8x8xf32> -> vector<2x8x4x8xf32>
    %59 = vector.shape_cast %58 : vector<2x8x4x8xf32> to vector<16x32xf32>
    %60 = arith.truncf %59 : vector<16x32xf32> to vector<16x32xbf16>
    %c0_19 = arith.constant 0 : index
    %c0_20 = arith.constant 0 : index
    %61 = vector.load %arg4[%c0_19, %c0_20] : memref<32x32xbf16, #tpu.memory_space<vmem>>, vector<32x32xbf16>
    %cst_21 = arith.constant dense<0.000000e+00> : vector<16x32xf32>
    %62 = tpu.matmul %60, %61, %cst_21 {dimension_numbers = #tpu.dot_dimension_numbers<[1], [0], [0], [1], [0, 0, 1, 1], [], []>} : vector<16x32xbf16>, vector<32x32xbf16>, vector<16x32xf32> -> vector<16x32xf32>
    %c0_22 = arith.constant 0 : index
    %c0_23 = arith.constant 0 : index
    %63 = vector.load %arg5[%c0_22, %c0_23] : memref<1x32xf32, #tpu.memory_space<vmem>>, vector<1x32xf32>
    %64 = vector.broadcast %63 : vector<1x32xf32> to vector<16x32xf32>
    %65 = arith.addf %62, %64 : vector<16x32xf32>
    %66 = arith.addf %1, %65 : vector<16x32xf32>
    %c0_24 = arith.constant 0 : index
    %c0_25 = arith.constant 0 : index
    %67 = vector.load %arg8[%c0_24, %c0_25] : memref<1x32xf32, #tpu.memory_space<vmem>>, vector<1x32xf32>
    %c0_26 = arith.constant 0 : index
    %c0_27 = arith.constant 0 : index
    %68 = vector.load %arg9[%c0_26, %c0_27] : memref<1x32xf32, #tpu.memory_space<vmem>>, vector<1x32xf32>
    %cst_28 = arith.constant dense<0.000000e+00> : vector<16xf32>
    %69 = vector.multi_reduction <add>, %66, %cst_28 [1] : vector<16x32xf32> to vector<16xf32>
    %70 = vector.shape_cast %69 : vector<16xf32> to vector<16x1xf32>
    %cst_29 = arith.constant 3.200000e+01 : f32
    %71 = vector.broadcast %cst_29 : f32 to vector<16x1xf32>
    %72 = arith.divf %70, %71 : vector<16x1xf32>
    %73 = arith.mulf %66, %66 : vector<16x32xf32>
    %cst_30 = arith.constant dense<0.000000e+00> : vector<16xf32>
    %74 = vector.multi_reduction <add>, %73, %cst_30 [1] : vector<16x32xf32> to vector<16xf32>
    %75 = vector.shape_cast %74 : vector<16xf32> to vector<16x1xf32>
    %cst_31 = arith.constant 3.200000e+01 : f32
    %76 = vector.broadcast %cst_31 : f32 to vector<16x1xf32>
    %77 = arith.divf %75, %76 : vector<16x1xf32>
    %78 = arith.mulf %72, %72 : vector<16x1xf32>
    %79 = arith.subf %77, %78 : vector<16x1xf32>
    %80 = vector.broadcast %72 : vector<16x1xf32> to vector<16x32xf32>
    %81 = arith.subf %66, %80 : vector<16x32xf32>
    %cst_32 = arith.constant 9.99999974E-6 : f32
    %82 = vector.broadcast %cst_32 : f32 to vector<16x1xf32>
    %83 = arith.addf %79, %82 : vector<16x1xf32>
    %84 = math.rsqrt %83 : vector<16x1xf32>
    %85 = vector.broadcast %84 : vector<16x1xf32> to vector<16x32xf32>
    %86 = arith.mulf %81, %85 : vector<16x32xf32>
    %87 = vector.broadcast %67 : vector<1x32xf32> to vector<16x32xf32>
    %88 = arith.mulf %86, %87 : vector<16x32xf32>
    %89 = vector.broadcast %68 : vector<1x32xf32> to vector<16x32xf32>
    %90 = arith.addf %88, %89 : vector<16x32xf32>
    %91 = arith.truncf %90 : vector<16x32xf32> to vector<16x32xbf16>
    %c0_33 = arith.constant 0 : index
    %c0_34 = arith.constant 0 : index
    %92 = vector.load %arg10[%c0_33, %c0_34] : memref<32x128xbf16, #tpu.memory_space<vmem>>, vector<32x128xbf16>
    %cst_35 = arith.constant dense<0.000000e+00> : vector<16x128xf32>
    %93 = tpu.matmul %91, %92, %cst_35 {dimension_numbers = #tpu.dot_dimension_numbers<[1], [0], [0], [1], [0, 0, 1, 1], [], []>} : vector<16x32xbf16>, vector<32x128xbf16>, vector<16x128xf32> -> vector<16x128xf32>
    %c0_36 = arith.constant 0 : index
    %c0_37 = arith.constant 0 : index
    %94 = vector.load %arg11[%c0_36, %c0_37] : memref<1x128xf32, #tpu.memory_space<vmem>>, vector<1x128xf32>
    %95 = vector.broadcast %94 : vector<1x128xf32> to vector<16x128xf32>
    %96 = arith.addf %93, %95 : vector<16x128xf32>
    %cst_38 = arith.constant 5.000000e-01 : f32
    %97 = vector.broadcast %cst_38 : f32 to vector<16x128xf32>
    %98 = arith.mulf %97, %96 : vector<16x128xf32>
    %cst_39 = arith.constant 4.471500e-02 : f32
    %99 = vector.broadcast %cst_39 : f32 to vector<16x128xf32>
    %100 = arith.mulf %99, %96 : vector<16x128xf32>
    %101 = arith.mulf %100, %96 : vector<16x128xf32>
    %102 = arith.mulf %101, %96 : vector<16x128xf32>
    %103 = arith.addf %96, %102 : vector<16x128xf32>
    %cst_40 = arith.constant 0.797884583 : f32
    %104 = vector.broadcast %cst_40 : f32 to vector<16x128xf32>
    %105 = arith.mulf %104, %103 : vector<16x128xf32>
    %106 = math.tanh %105 : vector<16x128xf32>
    %cst_41 = arith.constant 1.000000e+00 : f32
    %107 = vector.broadcast %cst_41 : f32 to vector<16x128xf32>
    %108 = arith.addf %107, %106 : vector<16x128xf32>
    %109 = arith.mulf %98, %108 : vector<16x128xf32>
    %110 = arith.truncf %109 : vector<16x128xf32> to vector<16x128xbf16>
    %c0_42 = arith.constant 0 : index
    %c0_43 = arith.constant 0 : index
    %111 = vector.load %arg12[%c0_42, %c0_43] : memref<128x32xbf16, #tpu.memory_space<vmem>>, vector<128x32xbf16>
    %cst_44 = arith.constant dense<0.000000e+00> : vector<16x32xf32>
    %112 = tpu.matmul %110, %111, %cst_44 {dimension_numbers = #tpu.dot_dimension_numbers<[1], [0], [0], [1], [0, 0, 1, 1], [], []>} : vector<16x128xbf16>, vector<128x32xbf16>, vector<16x32xf32> -> vector<16x32xf32>
    %c0_45 = arith.constant 0 : index
    %c0_46 = arith.constant 0 : index
    %113 = vector.load %arg13[%c0_45, %c0_46] : memref<1x32xf32, #tpu.memory_space<vmem>>, vector<1x32xf32>
    %114 = vector.broadcast %113 : vector<1x32xf32> to vector<16x32xf32>
    %115 = arith.addf %112, %114 : vector<16x32xf32>
    %116 = arith.addf %66, %115 : vector<16x32xf32>
    %117 = vector.shape_cast %116 : vector<16x32xf32> to vector<2x8x32xf32>
    %c0_47 = arith.constant 0 : index
    %c0_48 = arith.constant 0 : index
    %c0_49 = arith.constant 0 : index
    %118 = vector.load %arg14[%c0_47, %c0_48, %c0_49] : memref<2x8x32xf32, #tpu.memory_space<vmem>>, vector<2x8x32xf32>
    tpu.vector_store %arg14[%c0_47, %c0_48, %c0_49], %117 {strides = array<i32>} : memref<2x8x32xf32, #tpu.memory_space<vmem>>, vector<2x8x32xf32>,
    return
  }
  func.func @transform_0(%arg0: i32) -> (i32, i32, i32) {
    %c0_i32 = arith.constant 0 : i32
    %c0_i32_0 = arith.constant 0 : i32
    %c0_i32_1 = arith.constant 0 : i32
    return %arg0, %c0_i32, %c0_i32_0 : i32, i32, i32
  }
  func.func @transform_1(%arg0: i32) -> (i32, i32) {
    %c0_i32 = arith.constant 0 : i32
    %c0_i32_0 = arith.constant 0 : i32
    %c0_i32_1 = arith.constant 0 : i32
    return %c0_i32, %c0_i32_0 : i32, i32
  }
  func.func @transform_2(%arg0: i32) -> (i32, i32) {
    %c0_i32 = arith.constant 0 : i32
    %c0_i32_0 = arith.constant 0 : i32
    %c0_i32_1 = arith.constant 0 : i32
    return %c0_i32, %c0_i32_0 : i32, i32
  }
  func.func @transform_3(%arg0: i32) -> (i32, i32) {
    %c0_i32 = arith.constant 0 : i32
    %c0_i32_0 = arith.constant 0 : i32
    %c0_i32_1 = arith.constant 0 : i32
    return %c0_i32, %c0_i32_0 : i32, i32
  }
  func.func @transform_4(%arg0: i32) -> (i32, i32) {
    %c0_i32 = arith.constant 0 : i32
    %c0_i32_0 = arith.constant 0 : i32
    %c0_i32_1 = arith.constant 0 : i32
    return %c0_i32, %c0_i32_0 : i32, i32
  }
  func.func @transform_5(%arg0: i32) -> (i32, i32) {
    %c0_i32 = arith.constant 0 : i32
    %c0_i32_0 = arith.constant 0 : i32
    %c0_i32_1 = arith.constant 0 : i32
    return %c0_i32, %c0_i32_0 : i32, i32
  }
  func.func @transform_6(%arg0: i32) -> (i32, i32) {
    %c0_i32 = arith.constant 0 : i32
    %c0_i32_0 = arith.constant 0 : i32
    %c0_i32_1 = arith.constant 0 : i32
    return %c0_i32, %c0_i32_0 : i32, i32
  }
  func.func @transform_7(%arg0: i32) -> (i32, i32) {
    %c0_i32 = arith.constant 0 : i32
    %c0_i32_0 = arith.constant 0 : i32
    %c0_i32_1 = arith.constant 0 : i32
    return %c0_i32, %c0_i32_0 : i32, i32
  }
  func.func @transform_8(%arg0: i32) -> (i32, i32) {
    %c0_i32 = arith.constant 0 : i32
    %c0_i32_0 = arith.constant 0 : i32
    %c0_i32_1 = arith.constant 0 : i32
    return %c0_i32, %c0_i32_0 : i32, i32
  }
  func.func @transform_9(%arg0: i32) -> (i32, i32) {
    %c0_i32 = arith.constant 0 : i32
    %c0_i32_0 = arith.constant 0 : i32
    %c0_i32_1 = arith.constant 0 : i32
    return %c0_i32, %c0_i32_0 : i32, i32
  }
  func.func @transform_10(%arg0: i32) -> (i32, i32) {
    %c0_i32 = arith.constant 0 : i32
    %c0_i32_0 = arith.constant 0 : i32
    %c0_i32_1 = arith.constant 0 : i32
    return %c0_i32, %c0_i32_0 : i32, i32
  }
  func.func @transform_11(%arg0: i32) -> (i32, i32) {
    %c0_i32 = arith.constant 0 : i32
    %c0_i32_0 = arith.constant 0 : i32
    %c0_i32_1 = arith.constant 0 : i32
    return %c0_i32, %c0_i32_0 : i32, i32
  }
  func.func @transform_12(%arg0: i32) -> (i32, i32) {
    %c0_i32 = arith.constant 0 : i32
    %c0_i32_0 = arith.constant 0 : i32
    %c0_i32_1 = arith.constant 0 : i32
    return %c0_i32, %c0_i32_0 : i32, i32
  }
  func.func @transform_13(%arg0: i32) -> (i32, i32, i32) {
    %c0_i32 = arith.constant 0 : i32
    %c0_i32_0 = arith.constant 0 : i32
    %c0_i32_1 = arith.constant 0 : i32
    return %arg0, %c0_i32, %c0_i32_0 : i32, i32, i32
  }
}

</mosaic_0001>

<bundles_post_ra>
// kernel: tpu_custom_call.1
= control target key start
LH: loop header
LB: loop body
LE: loop exit
PB: predicated region body
PF: predicated region fallthrough
CT: control target
= control target key end

     0   :  { %vm50_vm0 = vcmask 261120   ;;  %s3517_s0 = inlined_call_operand.vmem [shape: f32[2,8,32], index: 0, kind: input, shape index: {}]   ;;  %s3518_s1 = inlined_call_operand.vmem [shape: f32[8,8], index: 1, kind: input, shape index: {}]   ;;  %s3519_s2 = inlined_call_operand.vmem [shape: bf16[32,96], index: 2, kind: input, shape index: {}]   ;;  %s3520_s3 = inlined_call_operand.vmem [shape: bf16[32,32], index: 3, kind: input, shape index: {}]   ;;  %s3521_s4 = inlined_call_operand.vmem [shape: f32[1,32], index: 4, kind: input, shape index: {}]   ;;  %s3522_s5 = inlined_call_operand.vmem [shape: f32[1,32], index: 5, kind: input, shape index: {}]   ;;  %s3523_s6 = inlined_call_operand.vmem [shape: f32[1,32], index: 6, kind: input, shape index: {}]   ;;  %s3524_s7 = inlined_call_operand.vmem [shape: f32[1,32], index: 7, kind: input, shape index: {}]   ;;  %s3525_s8 = inlined_call_operand.vmem [shape: f32[1,32], index: 8, kind: input, shape index: {}]   ;;  %s3526_s9 = inlined_call_operand.vmem [shape: bf16[32,128], index: 9, kind: input, shape index: {}]   ;;  %s3527_s10 = inlined_call_operand.vmem [shape: f32[1,128], index: 10, kind: input, shape index: {}]   ;;  %s3528_s11 = inlined_call_operand.vmem [shape: bf16[128,32], index: 11, kind: input, shape index: {}]   ;;  %s3529_s12 = inlined_call_operand.vmem [shape: f32[1,32], index: 12, kind: input, shape index: {}]   ;;  %s3530_s13 = inlined_call_operand.hbm [shape: f32[2,8,32], index: 13, kind: output, shape index: {}]  }
   0x1   :  { %v46_v0 = vld [vmem:[%s3517_s0] sm:$0xff]  ;;  %v47_v1 = vld [vmem:[%s3517_s0 + $0x8] sm:$0xff] }
   0x2   :  { %v51_v2 = vsel %vm50_vm0, %v46_v0, 0.0  ;;  %v60_v3 = vmul.f32 %v46_v0, %v46_v0  ;;  %v54_v4 = vsel %vm50_vm0, %v47_v1, 0.0  ;;  %v61_v5 = vmul.f32 %v47_v1, %v47_v1 }
   0x3   :  { %52 = vadd.xlane.f32.xlu0 %v51_v2 }
   0x4   :  { %v62_v6 = vsel %vm50_vm0, %v60_v3, 0.0  ;;  %v65_v7 = vsel %vm50_vm0, %v61_v5, 0.0 }
   0x5   :  { %63 = vadd.xlane.f32.xlu1 %v62_v6 }
   0x7   :  { %55 = vadd.xlane.f32.xlu0 %v54_v4 }
   0x9   :  { %66 = vadd.xlane.f32.xlu1 %v65_v7 }
   0xa   :  { %18 = vsyncpa [#allocation3], 0  ;;  %v2832_v8 = vld [vmem:[%s3519_s2] sm:$0xff]   ;;  %v2916_v9 = vmov 0.0   ;;  %vm2917_vm1 = vmmov 0   ;;  %v2833_v10 = vld [vmem:[%s3519_s2 + $0x8] sm:$0xff]   ;;  %v232_v44 = vlaneseq }
   0xb   :  { %2657 = vmatprep.subr.bf16.mxu0 %v2916_v9  ;;  %2661 = vmatprep.mubr.msk.bf16.mxu0 %vm2917_vm1, %v2916_v9  ;;  %v2543_v28 = vld [vmem:[%s3522_s5] ss:$0 sm:$0xff]  ;;  %s2918_s5 = smov 88   ;;  %s2919_s19 = smov 96   ;;  %v2925_v42 = vmov 1983009808  }
   0xc   :  { %2658 = vmatpush3.bf16.msra.mxu0 %v2832_v8  ;;  %2677 = vmatprep.subr.bf16.mxu1 %v2916_v9  ;;  %v2544_v33 = vld [vmem:[%s3523_s6] ss:$0 sm:$0xff]  ;;  %s2920_s6 = smov 80   ;;  %s2921_s20 = smov 120   ;;  %v230_v43 = vunpack.c.l.s4 %v2925_v42  ;;  %v2926_v47 = vmov 1934713408  }
   0xd   :  { %2659 = vmatprep.subr.bf16.mxu0 %v2916_v9  ;;  %2679 = vmatprep.mubr.msk.bf16.mxu1 %vm2917_vm1, %v2916_v9  ;;  %s2922_s21 = smov 72   ;;  %s2923_s22 = smov 104   ;;  %v294_v48 = vunpack.c.l.s4 %v2926_v47  ;;  %v233_v50 = vshrl.u32 %v232_v44, 7  ;;  %vm1068_vm2 = vcmask 64512   ;;  %vm1536_vm3 = vcmask 1043456  }
   0xe   :  { %s2924_s23 = smov 112   ;;  %v231_v49 = vunpack.c.0.s8 %v230_v43  ;;  %s2928_s26 = smov 48   ;;  %vm2200_vm4 = vcmask 130048   ;;  %vm2203_vm5 = vcmask 195584  }
   0xf   :  { %v295_v53 = vunpack.c.0.s8 %v294_v48  ;;  %s2929_s27 = smov 64   ;;  %s2930_s28 = smov 40  }
  0x10   :  { %2660 = vmatpush3.bf16.msra.mxu0 %v2833_v10  ;;  %v3057_v54 = vsub.s32 %v231_v49, %v233_v50  ;;  %s2931_s2 = smov 16   ;;  %s2932_s16 = smov 8  }
  0x11   :  { %2665 = vmatprep.subr.bf16.mxu0 %v2916_v9  ;;  %v3059_v61 = vsub.s32 %v295_v53, %v233_v50  ;;  %s2933_s17 = smov 24  }
  0x90   :  { %v53_v11 = vpop.xlane.xlu0 %52 }
  0x91   :  { %v58_v12 = vmul.f32 0.03125, %v53_v11 }
  0x92   :  { %v64_v13 = vpop.xlane.xlu1 %63 }
  0x93   :  { %v70_v14 = vmul.f32 %v58_v12, %v58_v12  ;;  %v68_v15 = vmul.f32 0.03125, %v64_v13  ;;  %v74_v25 = vsub.f32 %v46_v0, %v58_v12 }
  0x94   :  { %v56_v16 = vpop.xlane.xlu0 %55 }
  0x95   :  { %v72_v17 = vsub.f32 %v68_v15, %v70_v14  ;;  %v59_v18 = vmul.f32 0.03125, %v56_v16 }
  0x96   :  { %v67_v19 = vpop.xlane.xlu1 %66 }
  0x97   :  { %v76_v20 = vadd.f32 1e-05, %v72_v17  ;;  %v71_v21 = vmul.f32 %v59_v18, %v59_v18  ;;  %v69_v22 = vmul.f32 0.03125, %v67_v19  ;;  %v75_v29 = vsub.f32 %v47_v1, %v59_v18 }
  0x99   :  { %2846 = vrsqrt.f32 %v76_v20  ;;  %v73_v23 = vsub.f32 %v69_v22, %v71_v21 }
  0x9b   :  { %v77_v24 = vadd.f32 1e-05, %v73_v23 }
  0x9d   :  { %2848 = vrsqrt.f32 %v77_v24 }
  0xa3   :  { %v2847_v26 = vpop.eup %2846 }
  0xa4   :  { %v80_v27 = vmul.f32 %v2847_v26, %v74_v25 }
  0xa6   :  { %v88_v32 = vmul.f32 %v2543_v28, %v80_v27 }
  0xa7   :  { %v2849_v30 = vpop.eup %2848 }
  0xa8   :  { %v81_v31 = vmul.f32 %v2849_v30, %v75_v29  ;;  %v96_v35 = vadd.f32 %v2544_v33, %v88_v32 }
  0xaa   :  { %v89_v34 = vmul.f32 %v2543_v28, %v81_v31 }
  0xac   :  { %v97_v36 = vadd.f32 %v2544_v33, %v89_v34 }
  0xae   :  { %v98_v37 = vpack.c.bf16 %v97_v36, %v96_v35 }
  0xb0   :  { %2662 = vmatmul.mubr.msk.bf16.vlgmr.msra.gmra.mrb[0].mxu0 %vm50_vm0, %v98_v37 }
  0xb1   :  { %2667 = vmatprep.mubr.msk.bf16.mxu0 %vm2917_vm1, %v2916_v9 }
 0x183   :  { %v3039_v38 = vpop.f32.mrb[0].mxu0 }
 0x184   :  { %185 = vrot.lane.b32.xlu1 %v3039_v38, %s2918_s5  ;;  %179 = vrot.lane.b32.xlu0 %v3039_v38, %s2919_s19  ;;  %v2663_v39 = vpop.f32.mrb[1].mxu0 }
 0x185   :  { %v3043_v40 = vpop.f32.mrb[2].mxu0 }
 0x186   :  { %v2664_v41 = vpop.f32.mrb[3].mxu0 }
 0x188   :  { %191 = vrot.lane.b32.xlu1 %v3039_v38, %s2920_s6  ;;  %161 = vrot.lane.b32.xlu0 %v3039_v38, %s2921_s20 }
 0x18c   :  { %197 = vrot.lane.b32.xlu1 %v3039_v38, %s2922_s21  ;;  %173 = vrot.lane.b32.xlu0 %v3039_v38, %s2923_s22 }
 0x190   :  { %167 = vrot.lane.b32.xlu1 %v3039_v38, %s2924_s23  ;;  %187 = vrot.lane.b32.xlu0 %v3043_v40, %s2918_s5 }
 0x194   :  { %199 = vrot.lane.b32.xlu0 %v3043_v40, %s2922_s21  ;;  %181 = vrot.lane.b32.xlu1 %v3043_v40, %s2919_s19 }
 0x198   :  { %169 = vrot.lane.b32.xlu0 %v3043_v40, %s2924_s23  ;;  %193 = vrot.lane.b32.xlu1 %v3043_v40, %s2920_s6 }
 0x19c   :  { %163 = vrot.lane.b32.xlu1 %v3043_v40, %s2921_s20 }
 0x1a0   :  { %175 = vrot.lane.b32.xlu1 %v3043_v40, %s2923_s22 }
 0x1f6   :  { %v186_v45 = vpop.permute.xlu1 %185  ;;  %v180_v46 = vpop.permute.xlu0 %179 }
 0x1fa   :  { %v192_v51 = vpop.permute.xlu1 %191  ;;  %v162_v52 = vpop.permute.xlu0 %161 }
 0x1fb   :  { %v259_v55 = vcombine.low %v180_v46, %v192_v51  ;;  %v260_v56 = vcombine.high %v180_v46, %v192_v51 }
 0x1fd   :  { %v267_v62 = vrot.slane %v259_v55, %v3057_v54  ;;  %v274_v63 = vrot.slane %v260_v56, %v3057_v54 }
 0x1fe   :  { %v198_v57 = vpop.permute.xlu1 %197  ;;  %v174_v58 = vpop.permute.xlu0 %173 }
 0x1ff   :  { %v275_v59 = vcombine.low %v186_v45, %v198_v57  ;;  %v276_v60 = vcombine.high %v186_v45, %v198_v57  ;;  %v243_v2 = vcombine.low %v162_v52, %v174_v58  ;;  %v244_v3 = vcombine.high %v162_v52, %v174_v58 }
 0x201   :  { %v283_v0 = vrot.slane %v275_v59, %v3057_v54  ;;  %v290_v1 = vrot.slane %v276_v60, %v3057_v54  ;;  %v251_v17 = vrot.slane %v243_v2, %v3057_v54  ;;  %v258_v18 = vrot.slane %v244_v3, %v3057_v54 }
 0x202   :  { %v168_v4 = vpop.permute.xlu1 %167  ;;  %v188_v5 = vpop.permute.xlu0 %187 }
 0x203   :  { %v323_v6 = vcombine.low %v267_v62, %v283_v0  ;;  %v324_v7 = vcombine.high %v267_v62, %v283_v0  ;;  %v339_v8 = vcombine.low %v274_v63, %v290_v1  ;;  %v340_v10 = vcombine.high %v274_v63, %v290_v1 }
 0x204   :  { %v227_v11 = vcombine.low %v3039_v38, %v168_v4  ;;  %v228_v12 = vcombine.high %v3039_v38, %v168_v4 }
 0x205   :  { %v331_v13 = vrot.slane %v323_v6, %v3059_v61  ;;  %v338_v14 = vrot.slane %v324_v7, %v3059_v61  ;;  %v347_v15 = vrot.slane %v339_v8, %v3059_v61  ;;  %v354_v16 = vrot.slane %v340_v10, %v3059_v61 }
 0x206   :  { %v235_v19 = vrot.slane %v227_v11, %v3057_v54  ;;  %v242_v20 = vrot.slane %v228_v12, %v3057_v54  ;;  %v200_v21 = vpop.permute.xlu0 %199  ;;  %v182_v22 = vpop.permute.xlu1 %181 }
 0x207   :  { %v2549_v23 = vcombine.low %v331_v13, %v338_v14  ;;  %v2551_v24 = vcombine.high %v331_v13, %v338_v14  ;;  %v2553_v25 = vcombine.low %v347_v15, %v354_v16  ;;  %v2555_v26 = vcombine.high %v347_v15, %v354_v16 }
 0x208   :  { %v291_v27 = vcombine.low %v235_v19, %v251_v17  ;;  %v292_v28 = vcombine.high %v235_v19, %v251_v17  ;;  %v307_v29 = vcombine.low %v242_v20, %v258_v18  ;;  %v308_v30 = vcombine.high %v242_v20, %v258_v18 }
 0x209   :  { %v650_v31 = vrot.slane %v2549_v23, %v3057_v54  ;;  %v666_v32 = vrot.slane %v2551_v24, %v3057_v54  ;;  %v682_v33 = vrot.slane %v2553_v25, %v3057_v54  ;;  %v698_v34 = vrot.slane %v2555_v26, %v3057_v54 }
 0x20a   :  { %v299_v35 = vrot.slane %v291_v27, %v3059_v61  ;;  %v306_v36 = vrot.slane %v292_v28, %v3059_v61  ;;  %v315_v37 = vrot.slane %v307_v29, %v3059_v61  ;;  %v322_v39 = vrot.slane %v308_v30, %v3059_v61  ;;  %v170_v41 = vpop.permute.xlu0 %169  ;;  %v194_v42 = vpop.permute.xlu1 %193 }
 0x20b   :  { %v479_v43 = vcombine.low %v188_v5, %v200_v21  ;;  %v480_v44 = vcombine.high %v188_v5, %v200_v21  ;;  %v431_v45 = vcombine.low %v3043_v40, %v170_v41  ;;  %v432_v46 = vcombine.high %v3043_v40, %v170_v41 }
 0x20c   :  { %v2548_v47 = vcombine.low %v299_v35, %v306_v36  ;;  %v2550_v48 = vcombine.high %v299_v35, %v306_v36  ;;  %v2552_v49 = vcombine.low %v315_v37, %v322_v39  ;;  %v2554_v50 = vcombine.high %v315_v37, %v322_v39 }
 0x20d   :  { %v487_v51 = vrot.slane %v479_v43, %v3057_v54  ;;  %v494_v52 = vrot.slane %v480_v44, %v3057_v54  ;;  %v439_v53 = vrot.slane %v431_v45, %v3057_v54  ;;  %v463_v60 = vcombine.low %v182_v22, %v194_v42 }
 0x20e   :  { %v3089_v55 = vrot.slane %v2548_v47, %v3057_v54  ;;  %v3092_v56 = vrot.slane %v2550_v48, %v3057_v54  ;;  %v3095_v57 = vrot.slane %v2552_v49, %v3057_v54  ;;  %v3098_v58 = vrot.slane %v2554_v50, %v3057_v54  ;;  %v164_v59 = vpop.permute.xlu1 %163 }
 0x20f   :  { %v464_v62 = vcombine.high %v182_v22, %v194_v42  ;;  %v715_v63 = vcombine.low %v650_v31, %v666_v32  ;;  %v747_v0 = vcombine.low %v682_v33, %v698_v34  ;;  %v446_v2 = vrot.slane %v432_v46, %v3057_v54 }
 0x210   :  { %v699_v1 = vcombine.low %v3089_v55, %v3092_v56  ;;  %v716_v3 = vcombine.high %v650_v31, %v666_v32  ;;  %v748_v4 = vcombine.high %v682_v33, %v698_v34  ;;  %v471_v5 = vrot.slane %v463_v60, %v3057_v54 }
 0x211   :  { %v478_v6 = vrot.slane %v464_v62, %v3057_v54  ;;  %v723_v7 = vrot.slane %v715_v63, %v3059_v61  ;;  %v755_v8 = vrot.slane %v747_v0, %v3059_v61  ;;  %v731_v10 = vcombine.low %v3095_v57, %v3098_v58 }
 0x212   :  { %v176_v11 = vpop.permute.xlu1 %175  ;;  %v3110_v12 = vrot.slane %v716_v3, %v3059_v61  ;;  %v3113_v13 = vrot.slane %v748_v4, %v3059_v61  ;;  %v3116_v14 = vrot.slane %v699_v1, %v3059_v61  ;;  %v527_v15 = vcombine.low %v471_v5, %v487_v51 }
 0x213   :  { %v528_v16 = vcombine.high %v471_v5, %v487_v51  ;;  %v543_v17 = vcombine.low %v478_v6, %v494_v52  ;;  %v544_v18 = vcombine.high %v478_v6, %v494_v52  ;;  %v447_v19 = vcombine.low %v164_v59, %v176_v11 }
 0x214   :  { %v448_v20 = vcombine.high %v164_v59, %v176_v11  ;;  %v767_v21 = vcombine.low %v723_v7, %v755_v8  ;;  %v769_v22 = vcombine.low %v3110_v12, %v3113_v13  ;;  %v535_v23 = vrot.slane %v527_v15, %v3059_v61 }
 0x215   :  { %v542_v24 = vrot.slane %v528_v16, %v3059_v61  ;;  %v551_v25 = vrot.slane %v543_v17, %v3059_v61  ;;  %v558_v26 = vrot.slane %v544_v18, %v3059_v61  ;;  %v455_v27 = vrot.slane %v447_v19, %v3057_v54 }
 0x216   :  { %v462_v28 = vrot.slane %v448_v20, %v3057_v54  ;;  %v1051_v29 = vpack.c.bf16 %v767_v21, %v767_v21  ;;  %v1053_v30 = vpack.c.bf16 %v769_v22, %v769_v22  ;;  %v739_v44 = vrot.slane %v731_v10, %v3059_v61 }
 0x217   :  { %v2559_v31 = vcombine.low %v535_v23, %v542_v24  ;;  %v2561_v32 = vcombine.high %v535_v23, %v542_v24  ;;  %v2563_v33 = vcombine.low %v551_v25, %v558_v26  ;;  %v2565_v34 = vcombine.high %v551_v25, %v558_v26 }
 0x218   :  { %v495_v35 = vcombine.low %v439_v53, %v455_v27  ;;  %v496_v36 = vcombine.high %v439_v53, %v455_v27  ;;  %v511_v37 = vcombine.low %v446_v2, %v462_v28  ;;  %v512_v39 = vcombine.high %v446_v2, %v462_v28 }
 0x219   :  { %v854_v41 = vrot.slane %v2559_v31, %v3057_v54  ;;  %v870_v42 = vrot.slane %v2561_v32, %v3057_v54  ;;  %v886_v43 = vrot.slane %v2563_v33, %v3057_v54  ;;  %v902_v49 = vrot.slane %v2565_v34, %v3057_v54 }
 0x21a   :  { %v503_v45 = vrot.slane %v495_v35, %v3059_v61  ;;  %v510_v46 = vrot.slane %v496_v36, %v3059_v61  ;;  %v519_v47 = vrot.slane %v511_v37, %v3059_v61  ;;  %v526_v48 = vrot.slane %v512_v39, %v3059_v61 }
 0x21b   :  { %v1073_v50 = vsel %vm1068_vm2, %v1051_v29, 0  ;;  %v1165_v51 = vsel %vm1068_vm2, %v1053_v30, 0  ;;  %v700_v52 = vcombine.high %v3089_v55, %v3092_v56  ;;  %v763_v63 = vcombine.low %v3116_v14, %v739_v44 }
 0x21c   :  { %v2558_v53 = vcombine.low %v503_v45, %v510_v46  ;;  %v2560_v59 = vcombine.high %v503_v45, %v510_v46  ;;  %v2562_v60 = vcombine.low %v519_v47, %v526_v48  ;;  %v2564_v62 = vcombine.high %v519_v47, %v526_v48  ;;  %2666 = vmatpush3.bf16.xpose.msra.mxu0 %v1073_v50 }
 0x21d   :  { %2678 = vmatpush3.bf16.xpose.msra.mxu1 %v1165_v51  ;;  %2671 = vmatprep.subr.bf16.mxu0 %v2916_v9  ;;  %v714_v0 = vrot.slane %v700_v52, %v3059_v61  ;;  %v732_v1 = vcombine.high %v3095_v57, %v3098_v58  ;;  %v768_v5 = vcombine.high %v723_v7, %v755_v8 }
 0x21e   :  { %v847_v2 = vrot.slane %v2558_v53, %v3057_v54  ;;  %v863_v3 = vrot.slane %v2560_v59, %v3057_v54  ;;  %v879_v55 = vrot.slane %v2562_v60, %v3057_v54  ;;  %v895_v56 = vrot.slane %v2564_v62, %v3057_v54  ;;  %2689 = vmatprep.subr.bf16.mxu1 %v2916_v9  ;;  %v1067_v60 = vld [vmem:[%s3518_s1] sm:$0xff]  ;;  %s2927_s1 = smov 56  }
 0x21f   :  { %v746_v4 = vrot.slane %v732_v1, %v3059_v61  ;;  %v919_v6 = vcombine.low %v854_v41, %v870_v42  ;;  %v951_v10 = vcombine.low %v886_v43, %v902_v49  ;;  %v1043_v16 = vpack.c.bf16 %v763_v63, %v763_v63 }
 0x220   :  { %v903_v11 = vcombine.low %v847_v2, %v863_v3  ;;  %v935_v15 = vcombine.low %v879_v55, %v895_v56  ;;  %v1052_v57 = vpack.c.bf16 %v768_v5, %v768_v5  ;;  %v770_v21 = vcombine.high %v3110_v12, %v3113_v13 }
 0x221   :  { %v765_v17 = vcombine.low %v714_v0, %v746_v4  ;;  %v927_v58 = vrot.slane %v919_v6, %v3059_v61  ;;  %v959_v18 = vrot.slane %v951_v10, %v3059_v61  ;;  %v920_v7 = vcombine.high %v854_v41, %v870_v42 }
 0x222   :  { %v1119_v20 = vsel %vm1068_vm2, %v1052_v57, 0  ;;  %v911_v22 = vrot.slane %v903_v11, %v3059_v61  ;;  %v943_v23 = vrot.slane %v935_v15, %v3059_v61  ;;  %v764_v24 = vcombine.high %v3116_v14, %v739_v44 }
 0x223   :  { %2668 = vmatmul.mubr.msk.bf16.vlgmr.msra.gmra.mrb[4].mxu0 %vm1068_vm2, %v1043_v16  ;;  %v1045_v19 = vpack.c.bf16 %v765_v17, %v765_v17  ;;  %v971_v8 = vcombine.low %v927_v58, %v959_v18  ;;  %v934_v25 = vrot.slane %v920_v7, %v3059_v61  ;;  %v952_v26 = vcombine.high %v886_v43, %v902_v49 }
 0x224   :  { %2672 = vmatpush3.bf16.xpose.msra.mxu0 %v1119_v20  ;;  %2673 = vmatprep.mubr.msk.bf16.mxu0 %vm2917_vm1, %v2916_v9  ;;  %v1054_v13 = vpack.c.bf16 %v770_v21, %v770_v21  ;;  %v967_v29 = vcombine.low %v911_v22, %v943_v23  ;;  %v1044_v30 = vpack.c.bf16 %v764_v24, %v764_v24 }
 0x225   :  { %2680 = vmatmul.mubr.msk.bf16.vlgmr.msra.gmra.mrb[0].mxu1 %vm1068_vm2, %v1045_v19  ;;  %2683 = vmatprep.subr.bf16.mxu0 %v2916_v9  ;;  %v1055_v12 = vpack.c.bf16 %v971_v8, %v971_v8  ;;  %v966_v27 = vrot.slane %v952_v26, %v3059_v61  ;;  %v904_v32 = vcombine.high %v847_v2, %v863_v3 }
 0x226   :  { %2691 = vmatprep.mubr.msk.bf16.mxu1 %vm2917_vm1, %v2916_v9  ;;  %v936_v14 = vcombine.high %v879_v55, %v895_v56  ;;  %v1211_v33 = vsel %vm1068_vm2, %v1054_v13, 0  ;;  %v972_v34 = vcombine.high %v927_v58, %v959_v18  ;;  %v1047_v35 = vpack.c.bf16 %v967_v29, %v967_v29 }
 0x227   :  { %v1257_v28 = vsel %vm1068_vm2, %v1055_v12, 0  ;;  %v973_v31 = vcombine.low %v934_v25, %v966_v27  ;;  %v766_v37 = vcombine.high %v714_v0, %v746_v4  ;;  %v918_v39 = vrot.slane %v904_v32, %v3059_v61 }
 0x228   :  { %2690 = vmatpush3.bf16.xpose.msra.mxu1 %v1257_v28  ;;  %v950_v41 = vrot.slane %v936_v14, %v3059_v61  ;;  %v1056_v42 = vpack.c.bf16 %v972_v34, %v972_v34  ;;  %v974_v47 = vcombine.high %v934_v25, %v966_v27  ;;  %v968_v48 = vcombine.high %v911_v22, %v943_v23 }
 0x229   :  { %2701 = vmatprep.subr.bf16.mxu1 %v2916_v9  ;;  %v1057_v36 = vpack.c.bf16 %v973_v31, %v973_v31  ;;  %v1046_v44 = vpack.c.bf16 %v766_v37, %v766_v37 }
 0x22a   :  { %v969_v45 = vcombine.low %v918_v39, %v950_v41  ;;  %v1303_v46 = vsel %vm1068_vm2, %v1056_v42, 0  ;;  %v1058_v50 = vpack.c.bf16 %v974_v47, %v974_v47  ;;  %v1048_v51 = vpack.c.bf16 %v968_v48, %v968_v48 }
 0x22b   :  { %2674 = vmatmul.mubr.msk.bf16.vlgmr.msra.gmra.mrb[8].mxu0 %vm1068_vm2, %v1044_v30  ;;  %v1349_v43 = vsel %vm1068_vm2, %v1057_v36, 0  ;;  %v970_v53 = vcombine.high %v918_v39, %v950_v41 }
 0x22c   :  { %2684 = vmatpush3.bf16.xpose.msra.mxu0 %v1211_v33  ;;  %2685 = vmatprep.mubr.msk.bf16.mxu0 %vm2917_vm1, %v2916_v9  ;;  %v1049_v49 = vpack.c.bf16 %v969_v45, %v969_v45  ;;  %v1395_v52 = vsel %vm1068_vm2, %v1058_v50, 0 }
 0x22d   :  { %2695 = vmatprep.subr.bf16.mxu0 %v2916_v9  ;;  %v1050_v59 = vpack.c.bf16 %v970_v53, %v970_v53 }
 0x22f   :  { %2692 = vmatmul.mubr.msk.bf16.vlgmr.msra.gmra.mrb[4].mxu1 %vm1068_vm2, %v1047_v35 }
 0x230   :  { %2702 = vmatpush3.bf16.xpose.msra.mxu1 %v1349_v43  ;;  %2703 = vmatprep.mubr.msk.bf16.mxu1 %vm2917_vm1, %v2916_v9 }
 0x231   :  { %2713 = vmatprep.subr.bf16.mxu1 %v2916_v9 }
 0x233   :  { %2686 = vmatmul.mubr.msk.bf16.vlgmr.msra.gmra.mrb[12].mxu0 %vm1068_vm2, %v1046_v44 }
 0x234   :  { %2696 = vmatpush3.bf16.xpose.msra.mxu0 %v1303_v46  ;;  %2697 = vmatprep.mubr.msk.bf16.mxu0 %vm2917_vm1, %v2916_v9 }
 0x235   :  { %2707 = vmatprep.subr.bf16.mxu0 %v2916_v9 }
 0x237   :  { %2704 = vmatmul.mubr.msk.bf16.vlgmr.msra.gmra.mrb[8].mxu1 %vm1068_vm2, %v1049_v49 }
 0x238   :  { %2715 = vmatprep.mubr.msk.bf16.mxu1 %vm2917_vm1, %v2916_v9 }
 0x23b   :  { %2698 = vmatmul.mubr.msk.bf16.vlgmr.msra.gmra.mrb[16].mxu0 %vm1068_vm2, %v1048_v51 }
 0x23c   :  { %2708 = vmatpush3.bf16.xpose.msra.mxu0 %v1395_v52  ;;  %2709 = vmatprep.mubr.msk.bf16.mxu0 %vm2917_vm1, %v2916_v9 }
 0x23d   :  { %2719 = vmatprep.subr.bf16.mxu0 %v2916_v9 }
 0x243   :  { %2710 = vmatmul.mubr.msk.bf16.vlgmr.msra.gmra.mrb[20].mxu0 %vm1068_vm2, %v1050_v59 }
 0x244   :  { %2721 = vmatprep.mubr.msk.bf16.mxu0 %vm2917_vm1, %v2916_v9 }
 0x2f6   :  { %v1109_v62 = vpop.f32.mrb[4].mxu0 }
 0x2f7   :  { %v3200_v63 = vadd.f32 %v1109_v62, %v1067_v60  ;;  %v2669_v0 = vpop.f32.mrb[5].mxu0 }
 0x2f8   :  { %v1201_v1 = vpop.f32.mrb[0].mxu1  ;;  %v1112_v2 = vpop.f32.mrb[6].mxu0 }
 0x2f9   :  { %v3202_v3 = vadd.f32 %v1201_v1, %v1067_v60  ;;  %v2681_v55 = vpop.f32.mrb[1].mxu1  ;;  %v2670_v56 = vpop.f32.mrb[7].mxu0  ;;  %v1437_v4 = vsel %vm1068_vm2, %v3200_v63, -inf }
 0x2fa   :  { %v1204_v5 = vpop.f32.mrb[2].mxu1  ;;  %1438 = vmax.xlane.f32.xlu0 %v1437_v4 }
 0x2fb   :  { %v2682_v6 = vpop.f32.mrb[3].mxu1  ;;  %v1443_v10 = vsel %vm1068_vm2, %v3202_v3, -inf }
 0x2fe   :  { %1444 = vmax.xlane.f32.xlu0 %v1443_v10  ;;  %v1155_v11 = vpop.f32.mrb[8].mxu0 }
 0x2ff   :  { %v1156_v15 = vadd.f32 %v1155_v11, %v1067_v60  ;;  %v2675_v16 = vpop.f32.mrb[9].mxu0 }
 0x300   :  { %v1158_v17 = vpop.f32.mrb[10].mxu0 }
 0x301   :  { %v2676_v57 = vpop.f32.mrb[11].mxu0  ;;  %v1440_v58 = vsel %vm1068_vm2, %v1156_v15, -inf }
 0x302   :  { %1441 = vmax.xlane.f32.xlu1 %v1440_v58  ;;  %v1293_v18 = vpop.f32.mrb[4].mxu1 }
 0x303   :  { %v1294_v19 = vadd.f32 %v1293_v18, %v1067_v60  ;;  %v2693_v20 = vpop.f32.mrb[5].mxu1 }
 0x304   :  { %v1296_v21 = vpop.f32.mrb[6].mxu1 }
 0x305   :  { %v2694_v7 = vpop.f32.mrb[7].mxu1  ;;  %v1449_v8 = vsel %vm1068_vm2, %v1294_v19, -inf }
 0x306   :  { %v1247_v22 = vpop.f32.mrb[12].mxu0  ;;  %1450 = vmax.xlane.f32.xlu0 %v1449_v8 }
 0x307   :  { %v1248_v23 = vadd.f32 %v1247_v22, %v1067_v60  ;;  %v2687_v24 = vpop.f32.mrb[13].mxu0 }
 0x308   :  { %v1250_v25 = vpop.f32.mrb[14].mxu0 }
 0x309   :  { %v2688_v26 = vpop.f32.mrb[15].mxu0  ;;  %v1446_v12 = vsel %vm1068_vm2, %v1248_v23, -inf }
 0x30a   :  { %v1385_v13 = vpop.f32.mrb[8].mxu1  ;;  %1447 = vmax.xlane.f32.xlu0 %v1446_v12 }
 0x30b   :  { %v3211_v27 = vadd.f32 %v1385_v13, %v1067_v60  ;;  %v2705_v28 = vpop.f32.mrb[9].mxu1 }
 0x30c   :  { %v1388_v29 = vpop.f32.mrb[10].mxu1 }
 0x30d   :  { %v2706_v30 = vpop.f32.mrb[11].mxu1  ;;  %v1455_v31 = vsel %vm1068_vm2, %v3211_v27, -inf }
 0x30e   :  { %v1339_v32 = vpop.f32.mrb[16].mxu0  ;;  %1456 = vmax.xlane.f32.xlu0 %v1455_v31 }
 0x30f   :  { %v3215_v14 = vadd.f32 %v1339_v32, %v1067_v60  ;;  %v2699_v33 = vpop.f32.mrb[17].mxu0 }
 0x310   :  { %v1342_v34 = vpop.f32.mrb[18].mxu0 }
 0x311   :  { %v2700_v35 = vpop.f32.mrb[19].mxu0  ;;  %v1452_v43 = vsel %vm1068_vm2, %v3215_v14, -inf }
 0x313   :  { %209 = vrot.lane.b32.xlu1 %v3039_v38, %s2927_s1 }
 0x316   :  { %v1431_v36 = vpop.f32.mrb[20].mxu0 }
 0x317   :  { %v3219_v37 = vadd.f32 %v1431_v36, %v1067_v60  ;;  %215 = vrot.lane.b32.xlu1 %v3039_v38, %s2928_s26  ;;  %v2711_v39 = vpop.f32.mrb[21].mxu0 }
 0x318   :  { %v1434_v41 = vpop.f32.mrb[22].mxu0 }
 0x319   :  { %v2712_v42 = vpop.f32.mrb[23].mxu0  ;;  %v1458_v44 = vsel %vm1068_vm2, %v3219_v37, -inf }
 0x324   :  { %203 = vrot.lane.b32.xlu0 %v3039_v38, %s2929_s27 }
 0x33b   :  { %1453 = vmax.xlane.f32.xlu1 %v1452_v43 }
 0x33f   :  { %1459 = vmax.xlane.f32.xlu1 %v1458_v44 }
 0x350   :  { %221 = vrot.lane.b32.xlu1 %v3039_v38, %s2930_s28 }
 0x387   :  { %v1439_v45 = vpop.xlane.xlu0 %1438 }
 0x388   :  { %v1461_v46 = vsub.f32 %v3200_v63, %v1439_v45 }
 0x38a   :  { %v1469_v47 = vmul.f32 1.442695, %v1461_v46 }
 0x38b   :  { %v1445_v48 = vpop.xlane.xlu0 %1444 }
 0x38c   :  { %2850 = vpow2.f32 %v1469_v47  ;;  %v1463_v49 = vsub.f32 %v3202_v3, %v1445_v48 }
 0x38e   :  { %v1473_v50 = vmul.f32 1.442695, %v1463_v49 }
 0x38f   :  { %v1442_v51 = vpop.xlane.xlu1 %1441 }
 0x390   :  { %2852 = vpow2.f32 %v1473_v50  ;;  %v1462_v52 = vsub.f32 %v1156_v15, %v1442_v51 }
 0x392   :  { %v1471_v53 = vmul.f32 1.442695, %v1462_v52 }
 0x393   :  { %v1451_v59 = vpop.xlane.xlu0 %1450  ;;  %v210_v15 = vpop.permute.xlu1 %209 }
 0x394   :  { %2854 = vpow2.f32 %v1471_v53  ;;  %v1465_v60 = vsub.f32 %v1294_v19, %v1451_v59 }
 0x396   :  { %v3233_v62 = vpop.eup %2850  ;;  %v1477_v0 = vmul.f32 1.442695, %v1465_v60 }
 0x397   :  { %v1485_v38 = vsel %vm1068_vm2, %v3233_v62, 0.0  ;;  %v1448_v63 = vpop.xlane.xlu0 %1447  ;;  %v216_v16 = vpop.permute.xlu1 %215 }
 0x398   :  { %1486 = vadd.xlane.f32.xlu0 %v1485_v38  ;;  %2856 = vpow2.f32 %v1477_v0  ;;  %v1464_v1 = vsub.f32 %v1248_v23, %v1448_v63 }
 0x39a   :  { %v3237_v2 = vpop.eup %2852  ;;  %v1475_v3 = vmul.f32 1.442695, %v1464_v1 }
 0x39b   :  { %v1491_v55 = vsel %vm1068_vm2, %v3237_v2, 0.0  ;;  %v3259_v17 = vpop.xlane.xlu0 %1456 }
 0x39c   :  { %1492 = vadd.xlane.f32.xlu0 %v1491_v55  ;;  %2858 = vpow2.f32 %v1475_v3 }
 0x39e   :  { %v3241_v56 = vpop.eup %2854 }
 0x39f   :  { %v1488_v4 = vsel %vm1068_vm2, %v3241_v56, 0.0  ;;  %v204_v19 = vpop.permute.xlu0 %203 }
 0x3a0   :  { %1489 = vadd.xlane.f32.xlu1 %v1488_v4  ;;  %v363_v21 = vcombine.low %v204_v19, %v216_v16  ;;  %v364_v7 = vcombine.high %v204_v19, %v216_v16  ;;  %v1467_v16 = vsub.f32 %v3211_v27, %v3259_v17 }
 0x3a2   :  { %v3245_v5 = vpop.eup %2856  ;;  %v371_v25 = vrot.slane %v363_v21, %v3057_v54  ;;  %v378_v26 = vrot.slane %v364_v7, %v3057_v54 }
 0x3a3   :  { %v1497_v6 = vsel %vm1068_vm2, %v3245_v5, 0.0 }
 0x3a4   :  { %1498 = vadd.xlane.f32.xlu0 %v1497_v6 }
 0x3a6   :  { %v3249_v10 = vpop.eup %2858 }
 0x3a7   :  { %v1494_v11 = vsel %vm1068_vm2, %v3249_v10, 0.0 }
 0x3a8   :  { %1495 = vadd.xlane.f32.xlu1 %v1494_v11 }
 0x3b9   :  { %211 = vrot.lane.b32.xlu1 %v3043_v40, %s2927_s1 }
 0x3bd   :  { %217 = vrot.lane.b32.xlu1 %v3043_v40, %s2928_s26 }
 0x3c1   :  { %223 = vrot.lane.b32.xlu1 %v3043_v40, %s2930_s28 }
 0x3c8   :  { %v1454_v57 = vpop.xlane.xlu1 %1453 }
 0x3c9   :  { %v1466_v58 = vsub.f32 %v3215_v14, %v1454_v57  ;;  %v1481_v57 = vmul.f32 1.442695, %v1467_v16 }
 0x3cb   :  { %v1479_v18 = vmul.f32 1.442695, %v1466_v58 }
 0x3cc   :  { %v1460_v20 = vpop.xlane.xlu1 %1459 }
 0x3cd   :  { %2860 = vpow2.f32 %v1479_v18  ;;  %v1468_v8 = vsub.f32 %v3219_v37, %v1460_v20 }
 0x3cf   :  { %v1483_v28 = vmul.f32 1.442695, %v1468_v8 }
 0x3d0   :  { %v222_v22 = vpop.permute.xlu1 %221 }
 0x3d1   :  { %v379_v23 = vcombine.low %v210_v15, %v222_v22  ;;  %v380_v24 = vcombine.high %v210_v15, %v222_v22  ;;  %2862 = vpow2.f32 %v1483_v28 }
 0x3d2   :  { %2864 = vpow2.f32 %v1481_v57 }
 0x3d3   :  { %v387_v12 = vrot.slane %v379_v23, %v3057_v54  ;;  %v394_v13 = vrot.slane %v380_v24, %v3057_v54 }
 0x3d5   :  { %v395_v29 = vcombine.low %v371_v25, %v387_v12  ;;  %v396_v30 = vcombine.high %v371_v25, %v387_v12  ;;  %v411_v31 = vcombine.low %v378_v26, %v394_v13  ;;  %v412_v32 = vcombine.high %v378_v26, %v394_v13 }
 0x3d7   :  { %v3267_v14 = vpop.eup %2860  ;;  %v403_v33 = vrot.slane %v395_v29, %v3059_v61  ;;  %v410_v34 = vrot.slane %v396_v30, %v3059_v61  ;;  %v419_v35 = vrot.slane %v411_v31, %v3059_v61  ;;  %v426_v36 = vrot.slane %v412_v32, %v3059_v61 }
 0x3d8   :  { %v1500_v37 = vsel %vm1068_vm2, %v3267_v14, 0.0 }
 0x3d9   :  { %v771_v39 = vcombine.low %v403_v33, %v410_v34  ;;  %v2556_v41 = vcombine.high %v403_v33, %v410_v34  ;;  %v787_v42 = vcombine.low %v419_v35, %v426_v36  ;;  %v2557_v43 = vcombine.high %v419_v35, %v426_v36  ;;  %1501 = vadd.xlane.f32.xlu0 %v1500_v37 }
 0x3db   :  { %v778_v44 = vrot.slane %v771_v39, %v3057_v54  ;;  %v786_v45 = vrot.slane %v2556_v41, %v3057_v54  ;;  %v794_v46 = vrot.slane %v787_v42, %v3057_v54  ;;  %v802_v47 = vrot.slane %v2557_v43, %v3057_v54  ;;  %v3283_v3 = vpop.eup %2862 }
 0x3dc   :  { %v1506_v6 = vsel %vm1068_vm2, %v3283_v3, 0.0  ;;  %v3295_v58 = vpop.eup %2864 }
 0x3dd   :  { %v803_v48 = vcombine.low %v778_v44, %v786_v45  ;;  %v819_v49 = vcombine.low %v794_v46, %v802_v47  ;;  %v804_v50 = vcombine.high %v778_v44, %v786_v45  ;;  %v820_v51 = vcombine.high %v794_v46, %v802_v47 }
 0x3de   :  { %v1503_v18 = vsel %vm1068_vm2, %v3295_v58, 0.0 }
 0x3df   :  { %v811_v52 = vrot.slane %v803_v48, %v3059_v61  ;;  %v827_v53 = vrot.slane %v819_v49, %v3059_v61  ;;  %v818_v59 = vrot.slane %v804_v50, %v3059_v61  ;;  %v834_v60 = vrot.slane %v820_v51, %v3059_v61 }
 0x3e1   :  { %v835_v0 = vcombine.low %v811_v52, %v827_v53  ;;  %v836_v38 = vcombine.high %v811_v52, %v827_v53  ;;  %v837_v63 = vcombine.low %v818_v59, %v834_v60  ;;  %v838_v1 = vcombine.high %v818_v59, %v834_v60 }
 0x3e3   :  { %v1059_v55 = vpack.c.bf16 %v835_v0, %v835_v0  ;;  %v1060_v4 = vpack.c.bf16 %v836_v38, %v836_v38  ;;  %v1061_v8 = vpack.c.bf16 %v837_v63, %v837_v63  ;;  %v1062_v26 = vpack.c.bf16 %v838_v1, %v838_v1 }
 0x3e5   :  { %v1538_v11 = vsel %vm1536_vm3, %v1059_v55, 0  ;;  %v1584_v15 = vsel %vm1536_vm3, %v1060_v4, 0  ;;  %1507 = vadd.xlane.f32.xlu1 %v1506_v6  ;;  %v1630_v17 = vsel %vm1536_vm3, %v1061_v8, 0  ;;  %v1676_v28 = vsel %vm1536_vm3, %v1062_v26, 0 }
 0x3e6   :  { %2714 = vmatpush3.bf16.msra.mxu1 %v1538_v11  ;;  %2720 = vmatpush3.bf16.msra.mxu0 %v1584_v15 }
 0x3e7   :  { %2725 = vmatprep.subr.bf16.mxu1 %v2916_v9  ;;  %2731 = vmatprep.subr.bf16.mxu0 %v2916_v9 }
 0x3ef   :  { %205 = vrot.lane.b32.xlu0 %v3043_v40, %s2929_s27 }
 0x40e   :  { %1504 = vadd.xlane.f32.xlu0 %v1503_v18 }
 0x425   :  { %v1487_v19 = vpop.xlane.xlu0 %1486 }
 0x426   :  { %2866 = vrcp.f32 %v1487_v19 }
 0x429   :  { %v1493_v20 = vpop.xlane.xlu0 %1492 }
 0x42a   :  { %2868 = vrcp.f32 %v1493_v20 }
 0x42d   :  { %v1490_v21 = vpop.xlane.xlu1 %1489 }
 0x42e   :  { %2870 = vrcp.f32 %v1490_v21 }
 0x430   :  { %v2867_v7 = vpop.eup %2866 }
 0x431   :  { %v1517_v40 = vmul.f32 %v2867_v7, %v3233_v62  ;;  %v1499_v32 = vpop.xlane.xlu0 %1498 }
 0x433   :  { %v1525_v22 = vpack.c.bf16 %v1517_v40, %v1517_v40 }
 0x434   :  { %v2869_v27 = vpop.eup %2868 }
 0x435   :  { %2716 = vmatmul.mubr.msk.bf16.vlgmr.msra.gmra.mrb[12].mxu1 %vm1068_vm2, %v1525_v22  ;;  %v1496_v23 = vpop.xlane.xlu1 %1495  ;;  %v1519_v24 = vmul.f32 %v2869_v27, %v3237_v2 }
 0x436   :  { %2726 = vmatpush3.bf16.msra.mxu1 %v1630_v17  ;;  %2727 = vmatprep.mubr.msk.bf16.mxu1 %vm2917_vm1, %v2916_v9  ;;  %2872 = vrcp.f32 %v1496_v23 }
 0x437   :  { %2737 = vmatprep.subr.bf16.mxu1 %v2916_v9  ;;  %v1527_v13 = vpack.c.bf16 %v1519_v24, %v1519_v24  ;;  %2874 = vrcp.f32 %v1499_v32 }
 0x438   :  { %v2871_v25 = vpop.eup %2870 }
 0x439   :  { %v1518_v62 = vmul.f32 %v2871_v25, %v3241_v56  ;;  %v212_v30 = vpop.permute.xlu1 %211 }
 0x43b   :  { %v1526_v12 = vpack.c.bf16 %v1518_v62, %v1518_v62 }
 0x43d   :  { %2722 = vmatmul.mubr.msk.bf16.vlgmr.msra.gmra.mrb[24].mxu0 %vm1068_vm2, %v1526_v12  ;;  %2728 = vmatmul.mubr.msk.bf16.vlgmr.msra.gmra.mrb[16].mxu1 %vm1068_vm2, %v1527_v13  ;;  %v218_v31 = vpop.permute.xlu1 %217 }
 0x43e   :  { %2732 = vmatpush3.bf16.msra.mxu0 %v1676_v28  ;;  %2733 = vmatprep.mubr.msk.bf16.mxu0 %vm2917_vm1, %v2916_v9 }
 0x43f   :  { %2743 = vmatprep.subr.bf16.mxu0 %v2916_v9  ;;  %2739 = vmatprep.mubr.msk.bf16.mxu1 %vm2917_vm1, %v2916_v9 }
 0x440   :  { %v2873_v2 = vpop.eup %2872 }
 0x441   :  { %v1520_v56 = vmul.f32 %v2873_v2, %v3249_v10  ;;  %v224_v33 = vpop.permute.xlu1 %223  ;;  %v2875_v57 = vpop.eup %2874 }
 0x442   :  { %v583_v35 = vcombine.low %v212_v30, %v224_v33  ;;  %v584_v36 = vcombine.high %v212_v30, %v224_v33  ;;  %v1521_v17 = vmul.f32 %v2875_v57, %v3245_v5 }
 0x443   :  { %v1528_v29 = vpack.c.bf16 %v1520_v56, %v1520_v56 }
 0x444   :  { %v591_v42 = vrot.slane %v583_v35, %v3057_v54  ;;  %v598_v10 = vrot.slane %v584_v36, %v3057_v54  ;;  %v1529_v28 = vpack.c.bf16 %v1521_v17, %v1521_v17 }
 0x445   :  { %2734 = vmatmul.mubr.msk.bf16.vlgmr.msra.gmra.mrb[28].mxu0 %vm1068_vm2, %v1528_v29 }
 0x446   :  { %2745 = vmatprep.mubr.msk.bf16.mxu0 %vm2917_vm1, %v2916_v9 }
 0x466   :  { %v1502_v34 = vpop.xlane.xlu0 %1501 }
 0x467   :  { %2876 = vrcp.f32 %v1502_v34 }
 0x46a   :  { %v206_v37 = vpop.permute.xlu0 %205 }
 0x46b   :  { %v567_v39 = vcombine.low %v206_v37, %v218_v31  ;;  %v568_v41 = vcombine.high %v206_v37, %v218_v31 }
 0x46d   :  { %v575_v43 = vrot.slane %v567_v39, %v3057_v54  ;;  %v582_v44 = vrot.slane %v568_v41, %v3057_v54 }
 0x46f   :  { %v599_v45 = vcombine.low %v575_v43, %v591_v42  ;;  %v600_v46 = vcombine.high %v575_v43, %v591_v42  ;;  %v615_v47 = vcombine.low %v582_v44, %v598_v10  ;;  %v616_v48 = vcombine.high %v582_v44, %v598_v10 }
 0x471   :  { %v607_v49 = vrot.slane %v599_v45, %v3059_v61  ;;  %v614_v50 = vrot.slane %v600_v46, %v3059_v61  ;;  %v623_v51 = vrot.slane %v615_v47, %v3059_v61  ;;  %v630_v52 = vrot.slane %v616_v48, %v3059_v61  ;;  %v2877_v7 = vpop.eup %2876 }
 0x472   :  { %v1508_v4 = vpop.xlane.xlu1 %1507  ;;  %v1522_v23 = vmul.f32 %v2877_v7, %v3267_v14 }
 0x473   :  { %v975_v53 = vcombine.low %v607_v49, %v614_v50  ;;  %v2566_v59 = vcombine.high %v607_v49, %v614_v50  ;;  %v991_v60 = vcombine.low %v623_v51, %v630_v52  ;;  %v2567_v0 = vcombine.high %v623_v51, %v630_v52 }
 0x474   :  { %2878 = vrcp.f32 %v1508_v4  ;;  %v1530_v2 = vpack.c.bf16 %v1522_v23, %v1522_v23 }
 0x475   :  { %v982_v38 = vrot.slane %v975_v53, %v3057_v54  ;;  %v990_v63 = vrot.slane %v2566_v59, %v3057_v54  ;;  %v998_v1 = vrot.slane %v991_v60, %v3057_v54  ;;  %v1006_v55 = vrot.slane %v2567_v0, %v3057_v54 }
 0x477   :  { %v1007_v6 = vcombine.low %v982_v38, %v990_v63  ;;  %v1023_v11 = vcombine.low %v998_v1, %v1006_v55  ;;  %v1008_v15 = vcombine.high %v982_v38, %v990_v63  ;;  %v1024_v16 = vcombine.high %v998_v1, %v1006_v55 }
 0x479   :  { %v1015_v18 = vrot.slane %v1007_v6, %v3059_v61  ;;  %v1031_v19 = vrot.slane %v1023_v11, %v3059_v61  ;;  %v1022_v20 = vrot.slane %v1008_v15, %v3059_v61  ;;  %v1038_v21 = vrot.slane %v1024_v16, %v3059_v61 }
 0x47b   :  { %v1039_v40 = vcombine.low %v1015_v18, %v1031_v19  ;;  %v1040_v8 = vcombine.high %v1015_v18, %v1031_v19  ;;  %v1041_v22 = vcombine.low %v1022_v20, %v1038_v21  ;;  %v1042_v27 = vcombine.high %v1022_v20, %v1038_v21 }
 0x47d   :  { %v1063_v24 = vpack.c.bf16 %v1039_v40, %v1039_v40  ;;  %v1064_v25 = vpack.c.bf16 %v1040_v8, %v1040_v8  ;;  %v1065_v12 = vpack.c.bf16 %v1041_v22, %v1041_v22  ;;  %v1066_v13 = vpack.c.bf16 %v1042_v27, %v1042_v27 }
 0x47e   :  { %v2879_v56 = vpop.eup %2878 }
 0x47f   :  { %v1722_v62 = vsel %vm1536_vm3, %v1063_v24, 0  ;;  %v1768_v26 = vsel %vm1536_vm3, %v1064_v25, 0  ;;  %v1814_v5 = vsel %vm1536_vm3, %v1065_v12, 0  ;;  %v1860_v14 = vsel %vm1536_vm3, %v1066_v13, 0 }
 0x480   :  { %2738 = vmatpush3.bf16.msra.mxu1 %v1722_v62  ;;  %2744 = vmatpush3.bf16.msra.mxu0 %v1768_v26  ;;  %v1524_v29 = vmul.f32 %v2879_v56, %v3283_v3 }
 0x481   :  { %2749 = vmatprep.subr.bf16.mxu1 %v2916_v9  ;;  %2755 = vmatprep.subr.bf16.mxu0 %v2916_v9 }
 0x482   :  { %v1532_v30 = vpack.c.bf16 %v1524_v29, %v1524_v29 }
 0x483   :  { %2740 = vmatmul.mubr.msk.bf16.vlgmr.msra.gmra.mrb[20].mxu1 %vm1068_vm2, %v1529_v28  ;;  %2746 = vmatmul.mubr.msk.bf16.vlgmr.msra.gmra.mrb[32].mxu0 %vm1068_vm2, %v1530_v2 }
 0x484   :  { %2750 = vmatpush3.bf16.msra.mxu1 %v1814_v5  ;;  %2756 = vmatpush3.bf16.msra.mxu0 %v1860_v14 }
 0x485   :  { %2757 = vmatprep.mubr.msk.bf16.mxu0 %vm2917_vm1, %v2916_v9  ;;  %2751 = vmatprep.mubr.msk.bf16.mxu1 %vm2917_vm1, %v2916_v9 }
 0x486   :  { %2761 = vmatprep.subr.bf16.mxu1 %v2916_v9  ;;  %2769 = vmatprep.subr.bf16.mxu0 %v2916_v9 }
 0x48b   :  { %2758 = vmatmul.mubr.msk.bf16.vlgmr.msra.gmra.mrb[36].mxu0 %vm1068_vm2, %v1532_v30 }
 0x48c   :  { %2773 = vmatprep.mubr.msk.bf16.mxu0 %vm2917_vm1, %v2916_v9 }
 0x49b   :  { %v1505_v31 = vpop.xlane.xlu0 %1504 }
 0x49c   :  { %2880 = vrcp.f32 %v1505_v31 }
 0x4a6   :  { %v2881_v32 = vpop.eup %2880 }
 0x4a7   :  { %v1523_v3 = vmul.f32 %v2881_v32, %v3295_v58 }
 0x4a9   :  { %v1531_v33 = vpack.c.bf16 %v1523_v3, %v1523_v3 }
 0x4ab   :  { %2752 = vmatmul.mubr.msk.bf16.vlgmr.msra.gmra.mrb[24].mxu1 %vm1068_vm2, %v1531_v33 }
 0x4ac   :  { %2765 = vmatprep.mubr.msk.bf16.mxu1 %vm2917_vm1, %v2916_v9 }
 0x508   :  { %v1574_v34 = vpop.f32.mrb[12].mxu1 }
 0x509   :  { %v2717_v35 = vpop.f32.mrb[13].mxu1 }
 0x50a   :  { %v1577_v36 = vpop.f32.mrb[14].mxu1 }
 0x50b   :  { %v2718_v37 = vpop.f32.mrb[15].mxu1 }
 0x510   :  { %v1620_v39 = vpop.f32.mrb[24].mxu0  ;;  %v1666_v41 = vpop.f32.mrb[16].mxu1 }
 0x511   :  { %v1902_v42 = vcombine.low %v1574_v34, %v1666_v41  ;;  %v1903_v10 = vcombine.high %v1574_v34, %v1666_v41  ;;  %v2723_v43 = vpop.f32.mrb[25].mxu0  ;;  %v2729_v44 = vpop.f32.mrb[17].mxu1 }
 0x512   :  { %v1623_v45 = vpop.f32.mrb[26].mxu0  ;;  %v1669_v46 = vpop.f32.mrb[18].mxu1 }
 0x513   :  { %v2724_v47 = vpop.f32.mrb[27].mxu0  ;;  %v2730_v58 = vpop.f32.mrb[19].mxu1  ;;  %v1910_v53 = vrot.slane %v1902_v42, %v3057_v54  ;;  %v1917_v59 = vrot.slane %v1903_v10, %v3057_v54 }
 0x518   :  { %v1712_v48 = vpop.f32.mrb[28].mxu0 }
 0x519   :  { %v1918_v49 = vcombine.low %v1620_v39, %v1712_v48  ;;  %v1919_v50 = vcombine.high %v1620_v39, %v1712_v48  ;;  %v2735_v51 = vpop.f32.mrb[29].mxu0 }
 0x51a   :  { %v1715_v52 = vpop.f32.mrb[30].mxu0 }
 0x51b   :  { %v1926_v60 = vrot.slane %v1918_v49, %v3057_v54  ;;  %v1933_v0 = vrot.slane %v1919_v50, %v3057_v54  ;;  %v2736_v38 = vpop.f32.mrb[31].mxu0 }
 0x51d   :  { %v1934_v63 = vcombine.low %v1910_v53, %v1926_v60  ;;  %v1935_v1 = vcombine.high %v1910_v53, %v1926_v60  ;;  %v1950_v55 = vcombine.low %v1917_v59, %v1933_v0  ;;  %v1951_v4 = vcombine.high %v1917_v59, %v1933_v0 }
 0x51f   :  { %v1942_v6 = vrot.slane %v1934_v63, %v3059_v61  ;;  %v1949_v11 = vrot.slane %v1935_v1, %v3059_v61  ;;  %v1958_v15 = vrot.slane %v1950_v55, %v3059_v61  ;;  %v1965_v16 = vrot.slane %v1951_v4, %v3059_v61  ;;  %v2834_v4 = vld [vmem:[%s3520_s3] sm:$0xff]  }
 0x520   :  { %2762 = vmatpush3.bf16.msra.mxu1 %v2834_v4 }
 0x521   :  { %v2038_v57 = vcombine.low %v1942_v6, %v1949_v11  ;;  %v2584_v18 = vcombine.high %v1942_v6, %v1949_v11  ;;  %v2054_v19 = vcombine.low %v1958_v15, %v1965_v16  ;;  %v2585_v20 = vcombine.high %v1958_v15, %v1965_v16  ;;  %2763 = vmatprep.subr.bf16.mxu1 %v2916_v9 }
 0x523   :  { %v2045_v21 = vrot.slane %v2038_v57, %v3057_v54  ;;  %v2053_v7 = vrot.slane %v2584_v18, %v3057_v54  ;;  %v2061_v40 = vrot.slane %v2054_v19, %v3057_v54  ;;  %v2069_v8 = vrot.slane %v2585_v20, %v3057_v54 }
 0x525   :  { %v2071_v22 = vcombine.high %v2045_v21, %v2053_v7  ;;  %v2087_v27 = vcombine.high %v2061_v40, %v2069_v8  ;;  %v2070_v17 = vcombine.low %v2045_v21, %v2053_v7  ;;  %v2086_v23 = vcombine.low %v2061_v40, %v2069_v8 }
 0x527   :  { %v3372_v24 = vrot.slane %v2071_v22, %v3059_v61  ;;  %v3375_v25 = vrot.slane %v2087_v27, %v3059_v61  ;;  %v3378_v62 = vrot.slane %v2070_v17, %v3059_v61  ;;  %v3381_v26 = vrot.slane %v2086_v23, %v3059_v61  ;;  %v2835_v22 = vld [vmem:[%s3520_s3 + $0x8] sm:$0xff]  }
 0x528   :  { %2764 = vmatpush3.bf16.msra.mxu1 %v2835_v22 }
 0x529   :  { %v2104_v12 = vcombine.low %v3372_v24, %v3375_v25  ;;  %v2102_v13 = vcombine.low %v3378_v62, %v3381_v26  ;;  %v2103_v28 = vcombine.high %v3378_v62, %v3381_v26  ;;  %v2105_v2 = vcombine.high %v3372_v24, %v3375_v25  ;;  %2777 = vmatprep.subr.bf16.mxu1 %v2916_v9  ;;  %v2588_v62 = vld [vmem:[%s3521_s4] ss:$0 sm:$0xff] }
 0x556   :  { %v1758_v56 = vpop.f32.mrb[20].mxu1  ;;  %v1804_v5 = vpop.f32.mrb[32].mxu0 }
 0x557   :  { %v2741_v14 = vpop.f32.mrb[21].mxu1  ;;  %v2747_v29 = vpop.f32.mrb[33].mxu0 }
 0x558   :  { %v1761_v30 = vpop.f32.mrb[22].mxu1  ;;  %v1807_v31 = vpop.f32.mrb[34].mxu0 }
 0x559   :  { %v2742_v32 = vpop.f32.mrb[23].mxu1  ;;  %v2748_v3 = vpop.f32.mrb[35].mxu0 }
 0x55e   :  { %v1896_v33 = vpop.f32.mrb[36].mxu0 }
 0x55f   :  { %v1986_v34 = vcombine.low %v1804_v5, %v1896_v33  ;;  %v1987_v35 = vcombine.high %v1804_v5, %v1896_v33  ;;  %v2759_v36 = vpop.f32.mrb[37].mxu0 }
 0x560   :  { %v1899_v37 = vpop.f32.mrb[38].mxu0 }
 0x561   :  { %v2760_v39 = vpop.f32.mrb[39].mxu0  ;;  %v1994_v45 = vrot.slane %v1986_v34, %v3057_v54  ;;  %v2001_v46 = vrot.slane %v1987_v35, %v3057_v54 }
 0x57e   :  { %v1850_v41 = vpop.f32.mrb[24].mxu1 }
 0x57f   :  { %v1970_v42 = vcombine.low %v1758_v56, %v1850_v41  ;;  %v1971_v10 = vcombine.high %v1758_v56, %v1850_v41  ;;  %v2753_v43 = vpop.f32.mrb[25].mxu1 }
 0x580   :  { %v1853_v44 = vpop.f32.mrb[26].mxu1 }
 0x581   :  { %v1978_v47 = vrot.slane %v1970_v42, %v3057_v54  ;;  %v1985_v58 = vrot.slane %v1971_v10, %v3057_v54  ;;  %v2754_v48 = vpop.f32.mrb[27].mxu1  ;;  %v2890_v42 = vld [vmem:[%s3517_s0] sm:$0xff] }
 0x583   :  { %v2002_v49 = vcombine.low %v1978_v47, %v1994_v45  ;;  %v2003_v50 = vcombine.high %v1978_v47, %v1994_v45  ;;  %v2018_v51 = vcombine.low %v1985_v58, %v2001_v46  ;;  %v2019_v52 = vcombine.high %v1985_v58, %v2001_v46  ;;  %v2891_v45 = vld [vmem:[%s3517_s0 + $0x8] sm:$0xff]  ;;  %s2934_s0 = smov [#allocation2]  }
 0x584   :  { %s2532_s4 = sshll.u32 %s2934_s0, 4  ;;  %s2533_s4 = int_to_ptr.vmem [resolvable:$true] %s2532_s4 }
 0x585   :  { %v2010_v53 = vrot.slane %v2002_v49, %v3059_v61  ;;  %v2017_v59 = vrot.slane %v2003_v50, %v3059_v61  ;;  %v2026_v60 = vrot.slane %v2018_v51, %v3059_v61  ;;  %v2033_v0 = vrot.slane %v2019_v52, %v3059_v61  ;;  %v2836_v52 = vld [vmem:[%s3526_s9] sm:$0xff]   ;;  %s2892_s21 = scalar_lea.vmem %s2533_s4, 256  ;;  %p2897_p1 = scmp.lt.s32.totalorder %s2533_s4, %s2533_s4 }
 0x586   :  { %2770 = vmatpush3.bf16.msra.mxu0 %v2836_v52  ;;  %p2893_p0 = scmp.ne.s32.totalorder %s2533_s4, %s2892_s21  ;;  %p2898_p2 = scmp.lt.s32.totalorder %s2892_s21, %s2892_s21 }
 0x587   :  { %v2106_v38 = vcombine.low %v2010_v53, %v2017_v59  ;;  %v2586_v63 = vcombine.high %v2010_v53, %v2017_v59  ;;  %v2122_v1 = vcombine.low %v2026_v60, %v2033_v0  ;;  %v2587_v55 = vcombine.high %v2026_v60, %v2033_v0  ;;  %v2837_v53 = vld [vmem:[%s3526_s9 + $0x8] sm:$0xff]   ;;  %2771 = vmatprep.subr.bf16.mxu0 %v2916_v9 }
 0x588   :  { %p2899_p3 = por %p2898_p2, %p2897_p1 }
 0x589   :  { %v2113_v6 = vrot.slane %v2106_v38, %v3057_v54  ;;  %v2121_v11 = vrot.slane %v2586_v63, %v3057_v54  ;;  %v2129_v15 = vrot.slane %v2122_v1, %v3057_v54  ;;  %v2137_v16 = vrot.slane %v2587_v55, %v3057_v54 }
 0x58a   :  { %2772 = vmatpush3.bf16.msra.mxu0 %v2837_v53  ;;  %v2598_v53 = vld [vmem:[%s3529_s12] ss:$0 sm:$0xff]  ;;  %p2900_p4 = pnand %p2899_p3, %p2893_p0 }
 0x58b   :  { %v2139_v57 = vcombine.high %v2113_v6, %v2121_v11  ;;  %v2155_v18 = vcombine.high %v2129_v15, %v2137_v16  ;;  %v2138_v19 = vcombine.low %v2113_v6, %v2121_v11  ;;  %v2154_v20 = vcombine.low %v2129_v15, %v2137_v16 }
 0x58d   :  { %v2153_v21 = vrot.slane %v2139_v57, %v3059_v61  ;;  %v2169_v7 = vrot.slane %v2155_v18, %v3059_v61  ;;  %v2146_v40 = vrot.slane %v2138_v19, %v3059_v61  ;;  %v2162_v8 = vrot.slane %v2154_v20, %v3059_v61 }
 0x58f   :  { %v2172_v54 = vcombine.low %v2153_v21, %v2169_v7  ;;  %v2171_v27 = vcombine.high %v2146_v40, %v2162_v8  ;;  %v2170_v17 = vcombine.low %v2146_v40, %v2162_v8  ;;  %v2173_v23 = vcombine.high %v2153_v21, %v2169_v7  ;;  %v2592_v7 = vld [vmem:[%s3524_s7] ss:$0 sm:$0xff] }
 0x591   :  { %v2822_v24 = vpack.i.bf16 %v2172_v54, %v2104_v12  ;;  %v2817_v25 = vpack.i.bf16 %v2171_v27, %v2103_v28  ;;  %v2827_v56 = vpack.i.bf16 %v2173_v23, %v2105_v2  ;;  %v2593_v27 = vld [vmem:[%s3525_s8] ss:$0 sm:$0xff] }
 0x593   :  { %2823 = vrot.lane.b32.xlu1 %v2822_v24, %s2931_s2  ;;  %2818 = vrot.lane.b32.xlu0 %v2817_v25, %s2932_s16 }
 0x597   :  { %2828 = vrot.lane.b32.xlu0 %v2827_v56, %s2933_s17  ;;  %v2838_v56 = vld [vmem:[%s3528_s11] sm:$0xff]  }
 0x605   :  { %v2824_v61 = vpop.permute.xlu1 %2823  ;;  %v2819_v5 = vpop.permute.xlu0 %2818 }
 0x606   :  { %v2821_v14 = vunpack.i.h.bf16 %v2819_v5  ;;  %v2820_v29 = vunpack.i.l.bf16 %v2819_v5  ;;  %v2826_v30 = vunpack.i.h.bf16 %v2824_v61  ;;  %v2825_v31 = vunpack.i.l.bf16 %v2824_v61  ;;  %v2839_v61 = vld [vmem:[%s3528_s11 + $0x8] sm:$0xff]   ;;  %v2840_v5 = vld [vmem:[%s3528_s11 + $0x10] sm:$0xff]  }
 0x608   :  { %v2198_v12 = vsel %vm1068_vm2, %v2102_v13, %v2820_v29  ;;  %v2199_v28 = vsel %vm1068_vm2, %v2170_v17, %v2821_v14  ;;  %v2841_v14 = vld [vmem:[%s3528_s11 + $0x18] sm:$0xff]   ;;  %v2842_v29 = vld [vmem:[%s3528_s11 + $0x20] sm:$0xff]  }
 0x609   :  { %v2829_v2 = vpop.permute.xlu0 %2828  ;;  %v2201_v33 = vsel %vm2200_vm4, %v2198_v12, %v2825_v31  ;;  %v2202_v34 = vsel %vm2200_vm4, %v2199_v28, %v2826_v30  ;;  %v2843_v30 = vld [vmem:[%s3528_s11 + $0x28] sm:$0xff]   ;;  %v2844_v31 = vld [vmem:[%s3528_s11 + $0x30] sm:$0xff]   ;;  %v2845_v12 = vld [vmem:[%s3528_s11 + $0x38] sm:$0xff]  }
 0x60a   :  { %v2831_v32 = vunpack.i.h.bf16 %v2829_v2  ;;  %v2830_v3 = vunpack.i.l.bf16 %v2829_v2  ;;  %v2594_v28 = vld [vmem:[%s3527_s10] ss:$0 sm:$0xff] }
 0x60c   :  { %v2204_v35 = vsel %vm2203_vm5, %v2201_v33, %v2830_v3  ;;  %v2205_v36 = vsel %vm2203_vm5, %v2202_v34, %v2831_v32 }
 0x60d   :  { %v2206_v37 = vpack.c.bf16 %v2205_v36, %v2204_v35 }
 0x60f   :  { %2766 = vmatmul.mubr.msk.bf16.vlgmr.msra.gmra.mrb[28].mxu1 %vm50_vm0, %v2206_v37 }
 0x610   :  { %2793 = vmatprep.mubr.msk.bf16.mxu1 %vm2917_vm1, %v2916_v9  ;;  %2778 = vmatpush3.bf16.msra.mxu1 %v2838_v56 }
 0x611   :  { %2779 = vmatprep.subr.bf16.mxu1 %v2916_v9 }
 0x614   :  { %2780 = vmatpush3.bf16.msra.mxu1 %v2839_v61 }
 0x615   :  { %2781 = vmatprep.subr.bf16.mxu1 %v2916_v9 }
 0x618   :  { %2782 = vmatpush3.bf16.msra.mxu1 %v2840_v5 }
 0x619   :  { %2783 = vmatprep.subr.bf16.mxu1 %v2916_v9 }
 0x61c   :  { %2784 = vmatpush3.bf16.msra.mxu1 %v2841_v14 }
 0x61d   :  { %2785 = vmatprep.subr.bf16.mxu1 %v2916_v9 }
 0x620   :  { %2786 = vmatpush3.bf16.msra.mxu1 %v2842_v29 }
 0x621   :  { %2787 = vmatprep.subr.bf16.mxu1 %v2916_v9 }
 0x624   :  { %2788 = vmatpush3.bf16.msra.mxu1 %v2843_v30 }
 0x625   :  { %2789 = vmatprep.subr.bf16.mxu1 %v2916_v9 }
 0x628   :  { %2790 = vmatpush3.bf16.msra.mxu1 %v2844_v31 }
 0x629   :  { %2791 = vmatprep.subr.bf16.mxu1 %v2916_v9 }
 0x62c   :  { %2792 = vmatpush3.bf16.msra.mxu1 %v2845_v12 }
 0x6e2   :  { %v2267_v26 = vpop.f32.mrb[28].mxu1 }
 0x6e3   :  { %v2268_v13 = vadd.f32 %v2588_v62, %v2267_v26  ;;  %v2767_v39 = vpop.f32.mrb[29].mxu1 }
 0x6e4   :  { %v2270_v41 = vpop.f32.mrb[30].mxu1 }
 0x6e5   :  { %v3430_v10 = vadd.f32 %v2890_v42, %v2268_v13  ;;  %v2271_v43 = vadd.f32 %v2588_v62, %v2270_v41  ;;  %v2768_v44 = vpop.f32.mrb[31].mxu1 }
 0x6e7   :  { %v3435_v46 = vadd.f32 %v2891_v45, %v2271_v43  ;;  %v2278_v47 = vsel %vm50_vm0, %v3430_v10, 0.0  ;;  %v2286_v48 = vmul.f32 %v3430_v10, %v3430_v10 }
 0x6e8   :  { %2279 = vadd.xlane.f32.xlu1 %v2278_v47 }
 0x6e9   :  { %v2281_v58 = vsel %vm50_vm0, %v3435_v46, 0.0  ;;  %v2288_v49 = vsel %vm50_vm0, %v2286_v48, 0.0  ;;  %v2287_v50 = vmul.f32 %v3435_v46, %v3435_v46 }
 0x6ea   :  { %2282 = vadd.xlane.f32.xlu0 %v2281_v58 }
 0x6eb   :  { %v2291_v51 = vsel %vm50_vm0, %v2287_v50, 0.0 }
 0x6ee   :  { %2289 = vadd.xlane.f32.xlu0 %v2288_v49 }
 0x6f2   :  { %2292 = vadd.xlane.f32.xlu0 %v2291_v51 }
 0x775   :  { %v2280_v59 = vpop.xlane.xlu1 %2279 }
 0x776   :  { %v2284_v0 = vmul.f32 0.03125, %v2280_v59 }
 0x777   :  { %v2283_v60 = vpop.xlane.xlu0 %2282 }
 0x778   :  { %v2296_v63 = vmul.f32 %v2284_v0, %v2284_v0  ;;  %v2285_v1 = vmul.f32 0.03125, %v2283_v60  ;;  %v2300_v19 = vsub.f32 %v3430_v10, %v2284_v0 }
 0x77a   :  { %v2297_v11 = vmul.f32 %v2285_v1, %v2285_v1  ;;  %v2301_v40 = vsub.f32 %v3435_v46, %v2285_v1 }
 0x77b   :  { %v2290_v38 = vpop.xlane.xlu0 %2289 }
 0x77c   :  { %v2294_v55 = vmul.f32 0.03125, %v2290_v38 }
 0x77e   :  { %v2298_v4 = vsub.f32 %v2294_v55, %v2296_v63 }
 0x77f   :  { %v2293_v6 = vpop.xlane.xlu0 %2292 }
 0x780   :  { %v2302_v15 = vadd.f32 1e-05, %v2298_v4  ;;  %v2295_v16 = vmul.f32 0.03125, %v2293_v6 }
 0x782   :  { %2882 = vrsqrt.f32 %v2302_v15  ;;  %v2299_v57 = vsub.f32 %v2295_v16, %v2297_v11 }
 0x784   :  { %v2303_v18 = vadd.f32 1e-05, %v2299_v57 }
 0x786   :  { %2884 = vrsqrt.f32 %v2303_v18 }
 0x78c   :  { %v2883_v20 = vpop.eup %2882 }
 0x78d   :  { %v2306_v21 = vmul.f32 %v2883_v20, %v2300_v19 }
 0x78f   :  { %v2314_v54 = vmul.f32 %v2592_v7, %v2306_v21 }
 0x790   :  { %v2885_v8 = vpop.eup %2884 }
 0x791   :  { %v2307_v22 = vmul.f32 %v2885_v8, %v2301_v40  ;;  %v2322_v23 = vadd.f32 %v2593_v27, %v2314_v54 }
 0x793   :  { %v2315_v17 = vmul.f32 %v2592_v7, %v2307_v22 }
 0x795   :  { %v2323_v24 = vadd.f32 %v2593_v27, %v2315_v17 }
 0x797   :  { %v2324_v25 = vpack.c.bf16 %v2323_v24, %v2322_v23 }
 0x799   :  { %2774 = vmatmul.mubr.msk.bf16.vlgmr.msra.gmra.mrb[40].mxu0 %vm50_vm0, %v2324_v25 }
 0x86c   :  { %v2385_v2 = vpop.f32.mrb[40].mxu0 }
 0x86d   :  { %v2386_v32 = vadd.f32 %v2594_v28, %v2385_v2  ;;  %v2775_v3 = vpop.f32.mrb[41].mxu0 }
 0x86e   :  { %v2388_v33 = vpop.f32.mrb[42].mxu0 }
 0x86f   :  { %v2394_v34 = vmul.f32 0.044715, %v2386_v32  ;;  %v2389_v35 = vadd.f32 %v2594_v28, %v2388_v33  ;;  %v2776_v36 = vpop.f32.mrb[43].mxu0  ;;  %v2392_v58 = vmul.f32 0.5, %v2386_v32 }
 0x871   :  { %v2396_v37 = vmul.f32 %v2394_v34, %v2386_v32  ;;  %v2395_v62 = vmul.f32 0.044715, %v2389_v35  ;;  %v2393_v48 = vmul.f32 0.5, %v2389_v35 }
 0x873   :  { %v2398_v26 = vmul.f32 %v2396_v37, %v2386_v32  ;;  %v2397_v13 = vmul.f32 %v2395_v62, %v2389_v35 }
 0x875   :  { %v2400_v39 = vadd.f32 %v2398_v26, %v2386_v32  ;;  %v2399_v41 = vmul.f32 %v2397_v13, %v2389_v35 }
 0x877   :  { %v2402_v42 = vmul.f32 0.7978846, %v2400_v39  ;;  %v2401_v9 = vadd.f32 %v2399_v41, %v2389_v35 }
 0x879   :  { %2886 = vtanh.f32 %v2402_v42  ;;  %v2403_v43 = vmul.f32 0.7978846, %v2401_v9 }
 0x87b   :  { %2888 = vtanh.f32 %v2403_v43 }
 0x883   :  { %v2887_v44 = vpop.eup %2886 }
 0x884   :  { %v2406_v45 = vadd.f32 1.0, %v2887_v44 }
 0x885   :  { %v2889_v47 = vpop.eup %2888 }
 0x886   :  { %v2407_v49 = vadd.f32 1.0, %v2889_v47  ;;  %v2408_v50 = vmul.f32 %v2406_v45, %v2392_v58 }
 0x888   :  { %v2409_v51 = vmul.f32 %v2407_v49, %v2393_v48 }
 0x88a   :  { %v2410_v52 = vpack.c.bf16 %v2409_v51, %v2408_v50 }
 0x88c   :  { %2794 = vmatmul.mubr.bf16.vlgmr.msra.gmra.mrb[32].mxu1 %v2410_v52 }
 0x95f   :  { %v2516_v59 = vpop.f32.mrb[32].mxu1 }
 0x960   :  { %v2517_v60 = vadd.f32 %v2598_v53, %v2516_v59  ;;  %v2795_v0 = vpop.f32.mrb[33].mxu1 }
 0x961   :  { %v2519_v38 = vpop.f32.mrb[34].mxu1 }
 0x962   :  { %v2523_v63 = vadd.f32 %v2517_v60, %v3430_v10  ;;  %v2520_v1 = vadd.f32 %v2598_v53, %v2519_v38  ;;  %v2796_v55 = vpop.f32.mrb[35].mxu1 }
 0x964   :  { %2525 = vst.msk [vmem:[#allocation2] sm:$0xff] %vm50_vm0, %v2523_v63  ;;  %v2524_v4 = vadd.f32 %v2520_v1, %v3435_v46 }
 0x966   :  { %2526 = vst.msk [vmem:[#allocation2 + $0x8] sm:$0xff] %vm50_vm0, %v2524_v4 }
 0x967   :  { %2903 = shalt.err (!%p2900_p4)
}
 0x968   :  { %s2904_s9 = scalar_lea.hbm %s3530_s13, 256 }
 0x969   :  { %p2905_p5 = scmp.ne.s32.totalorder %s3530_s13, %s2904_s9  ;;  %p2908_p6 = scmp.lt.u32.totalorder %s2904_s9, %s3530_s13 }
 0x96b   :  { %p2910_p7 = pnand %p2908_p6, %p2905_p5 }
 0x96d   :  { %2913 = shalt.err (!%p2910_p7)
}
 0x96e   :  { %s2935_s26 = smov 128  }
 0x96f   :  { %2538 = dma.vmem_to_hbm [thread:$0]  %s2533_s4, 256, %s3530_s13, [#allocation3], %s2935_s26, %s2935_s26, %s2932_s16  }
 0x970   :  { %2914 = dma.done.wait [#allocation3], 256  }
 0x971   :  { %2915 = vsyncadd [#allocation3], 4294967040 }
 0x972   :  { %2542 = vsyncpa [#allocation3], 1 }

</bundles_post_ra>
